<compile_context>
chip_gen: v7x
topology: tpu7x:2x2x1
jax: 0.10.0
libtpu: 0.0.40
codegen_flags: <defaults>
</compile_context>

<pallas_src>
import numpy as np

import jax
import jax.numpy as jnp
from jax import lax
from jax.experimental import pallas as pl
from jax.experimental.pallas import tpu as pltpu

C_IN, C_STEM, C_OUT = 3, 16, 32
CPAD = 128          # lane width of every matmul N dim / activation slab
K0_PAD = 32         # stem patch K: 27 real + 1 const-one (bias) + 4 zero pad
GUARD = 8           # zero guard rows around h for the stride-1 c2 row shifts


# ---------------------------------------------------------------------------
# Fused kernel: stem -> downsample -> c1 -> c2 (+residual, ReLU), whole batch.
# ---------------------------------------------------------------------------
def _make_kernel(c1_taps, c2_taps, r2):
    """c1_taps / c2_taps: static tuples of (row_shift, needs_mask) per 3x3 tap."""

    def kernel(p0_ref, w0_ref, w1_ref, wds_ref, w2_ref, m1_ref, m2_ref, o_ref):
        f32, bf16 = jnp.float32, jnp.bfloat16

        # ---- stem 3x3/s2 conv (bias folded into w0 via the patches' ones col).
        # Output rows are phase-ordered (p, q, b, y, x); lane 16 == 1.0 (const),
        # lanes 17.. == 0.
        a1 = jnp.dot(p0_ref[...], w0_ref[...], preferred_element_type=f32)
        a1 = jnp.maximum(a1, 0.0)                                  # (4*r2, 128)

        # ---- downsample shortcut (1x1/s2): phase (0,0) rows; lane 16 carries
        # the folded bias through wds row 16.  No ReLU.
        ds_in = a1[0:r2, 0:2 * C_STEM].astype(bf16)                # (r2, 32)
        sc = jnp.dot(ds_in, wds_ref[...], preferred_element_type=f32)

        # ---- c1 3x3/s2: per-tap row-shift gather, lane-concat, ONE matmul.
        chunks = []
        for k, (shift, needs_mask) in enumerate(c1_taps):
            g = a1[shift:shift + r2, 0:C_STEM].astype(bf16)        # (r2, 16)
            if needs_mask:                                         # zero-pad taps
                g = g * m1_ref[:, k:k + 1]
            chunks.append(g)
        chunks.append(a1[0:r2, C_STEM:2 * C_STEM].astype(bf16))    # const-1 lane
        h = jnp.dot(jnp.concatenate(chunks, axis=1), w1_ref[...],
                    preferred_element_type=f32)
        h = jnp.maximum(h, 0.0)                                    # (r2, 128); lane 32 == 1

        # ---- c2 3x3/s1 + residual + ReLU: guard rows so row shifts never wrap.
        zeros_g = jnp.zeros((GUARD, CPAD), f32)
        hpad = jnp.concatenate([zeros_g, h, zeros_g], axis=0)      # (r2+16, 128)
        chunks2 = []
        for k, (shift, needs_mask) in enumerate(c2_taps):
            g = hpad[GUARD + shift:GUARD + shift + r2, 0:C_OUT].astype(bf16)
            if needs_mask:
                g = g * m2_ref[:, k:k + 1]
            chunks2.append(g)
        chunks2.append(h[:, C_OUT:C_OUT + 16].astype(bf16))        # const-1 lane
        y = jnp.dot(jnp.concatenate(chunks2, axis=1), w2_ref[...],
                    preferred_element_type=f32)
        o_ref[...] = jnp.maximum(y + sc, 0.0).astype(o_ref.dtype)  # lane-dense store

    return kernel


# ---------------------------------------------------------------------------
# Host-side weight packing: BN fold + tap-stacked K + bias-as-weight-row.
# (Image size is NOT baked in here; shifts/masks are derived from the actual
#  input shape inside the forward wrapper.)
# ---------------------------------------------------------------------------
def prepare_params(params):
    def fold(w, bn):
        scale, bias = bn
        return (np.asarray(w, np.float32) * np.asarray(scale, np.float32)[None, None, None, :],
                np.asarray(bias, np.float32))

    w0, b0 = fold(params["stem_w"], params["stem_bn"])   # (3,3,3,16)
    w1, b1 = fold(params["c1_w"], params["c1_bn"])       # (3,3,16,32)
    w2, b2 = fold(params["c2_w"], params["c2_bn"])       # (3,3,32,32)
    wd, bd = fold(params["ds_w"], params["ds_bn"])       # (1,1,16,32)

    W0 = np.zeros((K0_PAD, CPAD), np.float32)
    W0[:9 * C_IN, :C_STEM] = w0.reshape(9 * C_IN, C_STEM)
    W0[9 * C_IN, :C_STEM] = b0          # bias row, driven by the patches' ones column
    W0[9 * C_IN, C_STEM] = 1.0          # make a1 lane 16 a constant 1.0 (for later biases)

    W1 = np.zeros((9 * C_STEM + 16, CPAD), np.float32)
    W1[:9 * C_STEM, :C_OUT] = w1.reshape(9 * C_STEM, C_OUT)
    W1[9 * C_STEM, :C_OUT] = b1         # bias row, driven by a1's const-1 lane
    W1[9 * C_STEM, C_OUT] = 1.0         # make h lane 32 a constant 1.0

    WD = np.zeros((2 * C_STEM, CPAD), np.float32)
    WD[:C_STEM, :C_OUT] = wd.reshape(C_STEM, C_OUT)
    WD[C_STEM, :C_OUT] = bd             # bias row

    W2 = np.zeros((9 * C_OUT + 16, CPAD), np.float32)
    W2[:9 * C_OUT, :C_OUT] = w2.reshape(9 * C_OUT, C_OUT)
    W2[9 * C_OUT, :C_OUT] = b2          # bias row, driven by h's const-1 lane

    bf = jnp.bfloat16
    return {"w0": jnp.asarray(W0, bf), "w1": jnp.asarray(W1, bf),
            "wds": jnp.asarray(WD, bf), "w2": jnp.asarray(W2, bf)}


# ---------------------------------------------------------------------------
# ResNetVisionTower.forward equivalent (single pallas_call, whole batch).
# ---------------------------------------------------------------------------
@jax.jit
def resnet_vision_tower_forward(images_nchw, prepped):
    B, C, H, W = images_nchw.shape
    assert C == C_IN and H % 4 == 0 and W % 4 == 0, (C, H, W)
    H1, W1 = H // 2, W // 2                   # after stem (3x3/s2/p1)
    Hh, Wh = H1 // 2, W1 // 2                 # phase-grid size == block output H2,W2
    H2, W2 = Hh, Wh
    M2 = H2 * W2
    R2 = B * M2                               # rows per conv-output slab
    R1 = 4 * R2                               # phase-ordered stem-output rows (= B*H1*W1)
    assert R2 % 8 == 0, "batch*patches must be sublane aligned"
    assert W2 + 1 <= GUARD and R2 >= Wh + 2

    # ---- stem im2col patches, phase-major row order (p, q, b, y, x) --------
    x = jnp.transpose(images_nchw, (0, 2, 3, 1)).astype(jnp.bfloat16)
    xp = jnp.pad(x, ((0, 0), (1, 1), (1, 1), (0, 0)))              # (B,H+2,W+2,3)
    taps = []
    for i in range(3):
        for j in range(3):
            t = xp[:, i:i + 2 * H1:2, j:j + 2 * W1:2, :]           # (B,H1,W1,3)
            t = t.reshape(B, Hh, 2, Wh, 2, C)                      # u=2y+p, v=2x+q
            t = jnp.transpose(t, (2, 4, 0, 1, 3, 5))               # (p,q,B,y,x,C)
            taps.append(t.reshape(R1, C))
    ones = jnp.ones((R1, 1), jnp.bfloat16)                         # bias lane
    p0 = jnp.concatenate(taps + [ones], axis=1)                    # (R1, 28)
    p0 = jnp.pad(p0, ((0, 0), (0, K0_PAD - 9 * C - 1)))            # (R1, 32) bf16
    # TODO(synk): move the stem gather fully in-kernel (padded-input scratch).

    # ---- static row-shift tables + boundary masks (host constants) ---------
    c1_dyx, c1_shift = [], []
    for i in range(3):
        for j in range(3):
            p, dy = (0, 0) if i == 1 else (1, -1 if i == 0 else 0)
            q, dx = (0, 0) if j == 1 else (1, -1 if j == 0 else 0)
            c1_dyx.append((dy, dx))
            c1_shift.append((p * 2 + q) * R2 + dy * Wh + dx)       # phase block + offset

    m1 = np.ones((M2, 16), np.float32)
    for k, (dy, dx) in enumerate(c1_dyx):
        for ho in range(H2):
            for wo in range(W2):
                if not (0 <= ho + dy < Hh and 0 <= wo + dx < Wh):
                    m1[ho * W2 + wo, k] = 0.0

    c2_shift = []
    m2 = np.ones((M2, 16), np.float32)
    for i in range(3):
        for j in range(3):
            c2_shift.append((i - 1) * W2 + (j - 1))
            for ho in range(H2):
                for wo in range(W2):
                    if not (0 <= ho + i - 1 < H2 and 0 <= wo + j - 1 < W2):
                        m2[ho * W2 + wo, i * 3 + j] = 0.0

    m1_full = jnp.asarray(np.tile(m1, (B, 1)), jnp.bfloat16)       # (R2, 16)
    m2_full = jnp.asarray(np.tile(m2, (B, 1)), jnp.bfloat16)
    c1_taps = tuple((int(s), not bool(np.all(m1[:, k] == 1.0)))
                    for k, s in enumerate(c1_shift))
    c2_taps = tuple((int(s), not bool(np.all(m2[:, k] == 1.0)))
                    for k, s in enumerate(c2_shift))

    kernel = _make_kernel(c1_taps, c2_taps, R2)

    # Single grid step over the whole batch (tiny B: one TensorCore, constants
    # DMA'd once).  All operands fit VMEM trivially (< 200 KiB total).
    out = pl.pallas_call(
        kernel,
        out_shape=jax.ShapeDtypeStruct((R2, CPAD), jnp.float32),
        grid=(1,),
        in_specs=[
            pl.BlockSpec((R1, K0_PAD), lambda i: (0, 0)),              # stem patches
            pl.BlockSpec((K0_PAD, CPAD), lambda i: (0, 0)),            # w0
            pl.BlockSpec((9 * C_STEM + 16, CPAD), lambda i: (0, 0)),   # w1 (tap-stacked)
            pl.BlockSpec((2 * C_STEM, CPAD), lambda i: (0, 0)),        # w_ds
            pl.BlockSpec((9 * C_OUT + 16, CPAD), lambda i: (0, 0)),    # w2 (tap-stacked)
            pl.BlockSpec((R2, 16), lambda i: (0, 0)),                  # c1 boundary masks
            pl.BlockSpec((R2, 16), lambda i: (0, 0)),                  # c2 boundary masks
        ],
        out_specs=pl.BlockSpec((R2, CPAD), lambda i: (0, 0)),
        compiler_params=pltpu.CompilerParams(
            dimension_semantics=("arbitrary",)),
    )(p0, prepped["w0"], prepped["w1"], prepped["wds"], prepped["w2"],
      m1_full, m2_full)

    # (B*M2, 128) -> (B, num_patches, hidden_size), dropping channel padding.
    return out.reshape(B, M2, CPAD)[:, :, :C_OUT]

    # TODO(synk): pretrained HF ResNet weights / image_processor normalization
    # are not reproducible without a checkpoint; backbone weights are synthetic.


# ---------------------------------------------------------------------------
# Synthetic backbone parameters (deterministic, no checkpoint load)
# ---------------------------------------------------------------------------
def init_params(key):
    keys = jax.random.split(key, 8)

    def conv_w(k, kh, kw, cin, cout):
        fan_in = kh * kw * cin
        return (jax.random.normal(k, (kh, kw, cin, cout), jnp.float32)
                / jnp.sqrt(jnp.float32(fan_in)))

    def bn(k, c, eps=1e-5):
        k1, k2, k3 = jax.random.split(k, 3)
        gamma = 1.0 + 0.1 * jax.random.normal(k1, (c,), jnp.float32)
        beta = 0.1 * jax.random.normal(k2, (c,), jnp.float32)
        mean = 0.05 * jax.random.normal(k3, (c,), jnp.float32)
        var = jnp.ones((c,), jnp.float32)
        scale = gamma / jnp.sqrt(var + eps)   # fold BN into scale/bias
        bias = beta - mean * scale
        return scale, bias

    return {
        "stem_w": conv_w(keys[0], 3, 3, C_IN, C_STEM),  "stem_bn": bn(keys[1], C_STEM),
        "c1_w":   conv_w(keys[2], 3, 3, C_STEM, C_OUT), "c1_bn":   bn(keys[3], C_OUT),
        "c2_w":   conv_w(keys[4], 3, 3, C_OUT, C_OUT),  "c2_bn":   bn(keys[5], C_OUT),
        "ds_w":   conv_w(keys[6], 1, 1, C_STEM, C_OUT), "ds_bn":   bn(keys[7], C_OUT),
    }


# ---------------------------------------------------------------------------
# Pure-JAX reference (mirrors the kernel's bf16 operand quantization)
# ---------------------------------------------------------------------------
def _ref_forward(images_nchw, params):
    f32, bf16 = jnp.float32, jnp.bfloat16
    q = lambda a: a.astype(bf16).astype(f32)

    def conv_bn(x, w, bn, stride, pad, relu):
        scale, bias = bn
        y = lax.conv_general_dilated(
            q(x), q(w * scale[None, None, None, :]), (stride, stride),
            [(pad, pad), (pad, pad)],
            dimension_numbers=("NHWC", "HWIO", "NHWC"),
            precision=lax.Precision.HIGHEST,
            preferred_element_type=f32)
        y = y + q(bias)
        return jnp.maximum(y, 0.0) if relu else y

    x = jnp.transpose(images_nchw, (0, 2, 3, 1)).astype(f32)
    a1 = conv_bn(x, params["stem_w"], params["stem_bn"], 2, 1, True)
    sc = conv_bn(a1, params["ds_w"], params["ds_bn"], 2, 0, False)
    h = conv_bn(a1, params["c1_w"], params["c1_bn"], 2, 1, True)
    y = conv_bn(h, params["c2_w"], params["c2_bn"], 1, 1, False)
    y = jnp.maximum(y + sc, 0.0)
    B, Hf, Wf, Cf = y.shape
    return y.reshape(B, Hf * Wf, Cf)


if __name__ == "__main__":
    key = jax.random.PRNGKey(0)
    k_img, k_params = jax.random.split(key)

    # Small shapes consistent with the module: batch=2, RGB, 16x16 images (NCHW).
    images = jax.random.normal(k_img, (2, 3, 16, 16), jnp.float32)
    params = init_params(k_params)
    prepped = prepare_params(params)

    out = resnet_vision_tower_forward(images, prepped)
    out = jax.block_until_ready(out)

    # Final feature map is (2, 32, 4, 4) NCHW-equivalent -> sequence (2, 16, 32).
    assert out.shape == (2, 16, 32), out.shape
    assert out.dtype == jnp.float32

    ref = _ref_forward(images, params)
    err = float(jnp.max(jnp.abs(out - ref)))
    assert err < 1e-2, f"max abs err vs reference: {err}"
    print("KERNEL_OK")
</pallas_src>

<mosaic_0001>
module attributes {stable_mosaic.version = 11 : i64} {
  func.func @kernel(%arg0: i32, %arg1: memref<128x32xbf16, #tpu.memory_space<vmem>>, %arg2: memref<32x128xbf16, #tpu.memory_space<vmem>>, %arg3: memref<160x128xbf16, #tpu.memory_space<vmem>>, %arg4: memref<32x128xbf16, #tpu.memory_space<vmem>>, %arg5: memref<304x128xbf16, #tpu.memory_space<vmem>>, %arg6: memref<32x16xbf16, #tpu.memory_space<vmem>>, %arg7: memref<32x16xbf16, #tpu.memory_space<vmem>>, %arg8: memref<32x128xf32, #tpu.memory_space<vmem>>) attributes {dimension_semantics = [#tpu.dimension_semantics<arbitrary>], iteration_bounds = array<i64: 1>, scalar_prefetch = 0 : i64, scratch_operands = 0 : i64, tpu.core_type = #tpu.core_type<tc>, window_params = [{pipeline_mode = #tpu.pipeline_mode<synchronous>, transform_indices = @transform_0, window_bounds = array<i64: 128, 32>}, {pipeline_mode = #tpu.pipeline_mode<synchronous>, transform_indices = @transform_1, window_bounds = array<i64: 32, 128>}, {pipeline_mode = #tpu.pipeline_mode<synchronous>, transform_indices = @transform_2, window_bounds = array<i64: 160, 128>}, {pipeline_mode = #tpu.pipeline_mode<synchronous>, transform_indices = @transform_3, window_bounds = array<i64: 32, 128>}, {pipeline_mode = #tpu.pipeline_mode<synchronous>, transform_indices = @transform_4, window_bounds = array<i64: 304, 128>}, {pipeline_mode = #tpu.pipeline_mode<synchronous>, transform_indices = @transform_5, window_bounds = array<i64: 32, 16>}, {pipeline_mode = #tpu.pipeline_mode<synchronous>, transform_indices = @transform_6, window_bounds = array<i64: 32, 16>}, {pipeline_mode = #tpu.pipeline_mode<synchronous>, transform_indices = @transform_7, window_bounds = array<i64: 32, 128>}]} {
    %c0 = arith.constant 0 : index
    %c0_0 = arith.constant 0 : index
    %0 = vector.load %arg1[%c0, %c0_0] : memref<128x32xbf16, #tpu.memory_space<vmem>>, vector<128x32xbf16>
    %c0_1 = arith.constant 0 : index
    %c0_2 = arith.constant 0 : index
    %1 = vector.load %arg2[%c0_1, %c0_2] : memref<32x128xbf16, #tpu.memory_space<vmem>>, vector<32x128xbf16>
    %cst = arith.constant dense<0.000000e+00> : vector<128x128xf32>
    %2 = tpu.matmul %0, %1, %cst {dimension_numbers = #tpu.dot_dimension_numbers<[1], [0], [0], [1], [0, 0, 1, 1], [], []>} : vector<128x32xbf16>, vector<32x128xbf16>, vector<128x128xf32> -> vector<128x128xf32>
    %cst_3 = arith.constant 0.000000e+00 : f32
    %3 = vector.broadcast %cst_3 : f32 to vector<128x128xf32>
    %4 = arith.maximumf %2, %3 : vector<128x128xf32>
    %5 = vector.extract_strided_slice %4 {offsets = [0, 0], sizes = [32, 32], strides = [1, 1]} : vector<128x128xf32> to vector<32x32xf32>
    %6 = arith.truncf %5 : vector<32x32xf32> to vector<32x32xbf16>
    %c0_4 = arith.constant 0 : index
    %c0_5 = arith.constant 0 : index
    %7 = vector.load %arg4[%c0_4, %c0_5] : memref<32x128xbf16, #tpu.memory_space<vmem>>, vector<32x128xbf16>
    %cst_6 = arith.constant dense<0.000000e+00> : vector<32x128xf32>
    %8 = tpu.matmul %6, %7, %cst_6 {dimension_numbers = #tpu.dot_dimension_numbers<[1], [0], [0], [1], [0, 0, 1, 1], [], []>} : vector<32x32xbf16>, vector<32x128xbf16>, vector<32x128xf32> -> vector<32x128xf32>
    %9 = vector.extract_strided_slice %4 {offsets = [91, 0], sizes = [32, 16], strides = [1, 1]} : vector<128x128xf32> to vector<32x16xf32>
    %10 = arith.truncf %9 : vector<32x16xf32> to vector<32x16xbf16>
    %c0_7 = arith.constant 0 : index
    %c0_8 = arith.constant 0 : index
    %11 = vector.load %arg6[%c0_7, %c0_8] : memref<32x16xbf16, #tpu.memory_space<vmem>>, vector<32x1xbf16>
    %12 = vector.broadcast %11 : vector<32x1xbf16> to vector<32x16xbf16>
    %13 = arith.mulf %10, %12 : vector<32x16xbf16>
    %14 = vector.extract_strided_slice %4 {offsets = [60, 0], sizes = [32, 16], strides = [1, 1]} : vector<128x128xf32> to vector<32x16xf32>
    %15 = arith.truncf %14 : vector<32x16xf32> to vector<32x16xbf16>
    %c0_9 = arith.constant 0 : index
    %c1 = arith.constant 1 : index
    %16 = vector.load %arg6[%c0_9, %c1] : memref<32x16xbf16, #tpu.memory_space<vmem>>, vector<32x1xbf16>
    %17 = vector.broadcast %16 : vector<32x1xbf16> to vector<32x16xbf16>
    %18 = arith.mulf %15, %17 : vector<32x16xbf16>
    %19 = vector.extract_strided_slice %4 {offsets = [92, 0], sizes = [32, 16], strides = [1, 1]} : vector<128x128xf32> to vector<32x16xf32>
    %20 = arith.truncf %19 : vector<32x16xf32> to vector<32x16xbf16>
    %c0_10 = arith.constant 0 : index
    %c2 = arith.constant 2 : index
    %21 = vector.load %arg6[%c0_10, %c2] : memref<32x16xbf16, #tpu.memory_space<vmem>>, vector<32x1xbf16>
    %22 = vector.broadcast %21 : vector<32x1xbf16> to vector<32x16xbf16>
    %23 = arith.mulf %20, %22 : vector<32x16xbf16>
    %24 = vector.extract_strided_slice %4 {offsets = [31, 0], sizes = [32, 16], strides = [1, 1]} : vector<128x128xf32> to vector<32x16xf32>
    %25 = arith.truncf %24 : vector<32x16xf32> to vector<32x16xbf16>
    %c0_11 = arith.constant 0 : index
    %c3 = arith.constant 3 : index
    %26 = vector.load %arg6[%c0_11, %c3] : memref<32x16xbf16, #tpu.memory_space<vmem>>, vector<32x1xbf16>
    %27 = vector.broadcast %26 : vector<32x1xbf16> to vector<32x16xbf16>
    %28 = arith.mulf %25, %27 : vector<32x16xbf16>
    %29 = vector.extract_strided_slice %4 {offsets = [0, 0], sizes = [32, 16], strides = [1, 1]} : vector<128x128xf32> to vector<32x16xf32>
    %30 = arith.truncf %29 : vector<32x16xf32> to vector<32x16xbf16>
    %31 = vector.extract_strided_slice %4 {offsets = [32, 0], sizes = [32, 16], strides = [1, 1]} : vector<128x128xf32> to vector<32x16xf32>
    %32 = arith.truncf %31 : vector<32x16xf32> to vector<32x16xbf16>
    %33 = vector.extract_strided_slice %4 {offsets = [95, 0], sizes = [32, 16], strides = [1, 1]} : vector<128x128xf32> to vector<32x16xf32>
    %34 = arith.truncf %33 : vector<32x16xf32> to vector<32x16xbf16>
    %c0_12 = arith.constant 0 : index
    %c6 = arith.constant 6 : index
    %35 = vector.load %arg6[%c0_12, %c6] : memref<32x16xbf16, #tpu.memory_space<vmem>>, vector<32x1xbf16>
    %36 = vector.broadcast %35 : vector<32x1xbf16> to vector<32x16xbf16>
    %37 = arith.mulf %34, %36 : vector<32x16xbf16>
    %38 = vector.extract_strided_slice %4 {offsets = [64, 0], sizes = [32, 16], strides = [1, 1]} : vector<128x128xf32> to vector<32x16xf32>
    %39 = arith.truncf %38 : vector<32x16xf32> to vector<32x16xbf16>
    %40 = vector.extract_strided_slice %4 {offsets = [96, 0], sizes = [32, 16], strides = [1, 1]} : vector<128x128xf32> to vector<32x16xf32>
    %41 = arith.truncf %40 : vector<32x16xf32> to vector<32x16xbf16>
    %42 = vector.extract_strided_slice %4 {offsets = [0, 16], sizes = [32, 16], strides = [1, 1]} : vector<128x128xf32> to vector<32x16xf32>
    %43 = arith.truncf %42 : vector<32x16xf32> to vector<32x16xbf16>
    %44 = tpu.concatenate %13, %18, %23, %28, %30, %32, %37, %39, %41, %43 in 1 : vector<32x16xbf16>, vector<32x16xbf16>, vector<32x16xbf16>, vector<32x16xbf16>, vector<32x16xbf16>, vector<32x16xbf16>, vector<32x16xbf16>, vector<32x16xbf16>, vector<32x16xbf16>, vector<32x16xbf16> -> vector<32x160xbf16>
    %c0_13 = arith.constant 0 : index
    %c0_14 = arith.constant 0 : index
    %45 = vector.load %arg3[%c0_13, %c0_14] : memref<160x128xbf16, #tpu.memory_space<vmem>>, vector<160x128xbf16>
    %cst_15 = arith.constant dense<0.000000e+00> : vector<32x128xf32>
    %46 = tpu.matmul %44, %45, %cst_15 {dimension_numbers = #tpu.dot_dimension_numbers<[1], [0], [0], [1], [0, 0, 1, 1], [], []>} : vector<32x160xbf16>, vector<160x128xbf16>, vector<32x128xf32> -> vector<32x128xf32>
    %cst_16 = arith.constant 0.000000e+00 : f32
    %47 = vector.broadcast %cst_16 : f32 to vector<32x128xf32>
    %48 = arith.maximumf %46, %47 : vector<32x128xf32>
    %cst_17 = arith.constant 0.000000e+00 : f32
    %49 = vector.broadcast %cst_17 : f32 to vector<8x128xf32>
    %50 = tpu.concatenate %49, %48, %49 in 0 : vector<8x128xf32>, vector<32x128xf32>, vector<8x128xf32> -> vector<48x128xf32>
    %51 = vector.extract_strided_slice %50 {offsets = [3, 0], sizes = [32, 32], strides = [1, 1]} : vector<48x128xf32> to vector<32x32xf32>
    %52 = arith.truncf %51 : vector<32x32xf32> to vector<32x32xbf16>
    %c0_18 = arith.constant 0 : index
    %c0_19 = arith.constant 0 : index
    %53 = vector.load %arg7[%c0_18, %c0_19] : memref<32x16xbf16, #tpu.memory_space<vmem>>, vector<32x1xbf16>
    %54 = vector.broadcast %53 : vector<32x1xbf16> to vector<32x32xbf16>
    %55 = arith.mulf %52, %54 : vector<32x32xbf16>
    %56 = vector.extract_strided_slice %50 {offsets = [4, 0], sizes = [32, 32], strides = [1, 1]} : vector<48x128xf32> to vector<32x32xf32>
    %57 = arith.truncf %56 : vector<32x32xf32> to vector<32x32xbf16>
    %c0_20 = arith.constant 0 : index
    %c1_21 = arith.constant 1 : index
    %58 = vector.load %arg7[%c0_20, %c1_21] : memref<32x16xbf16, #tpu.memory_space<vmem>>, vector<32x1xbf16>
    %59 = vector.broadcast %58 : vector<32x1xbf16> to vector<32x32xbf16>
    %60 = arith.mulf %57, %59 : vector<32x32xbf16>
    %61 = vector.extract_strided_slice %50 {offsets = [5, 0], sizes = [32, 32], strides = [1, 1]} : vector<48x128xf32> to vector<32x32xf32>
    %62 = arith.truncf %61 : vector<32x32xf32> to vector<32x32xbf16>
    %c0_22 = arith.constant 0 : index
    %c2_23 = arith.constant 2 : index
    %63 = vector.load %arg7[%c0_22, %c2_23] : memref<32x16xbf16, #tpu.memory_space<vmem>>, vector<32x1xbf16>
    %64 = vector.broadcast %63 : vector<32x1xbf16> to vector<32x32xbf16>
    %65 = arith.mulf %62, %64 : vector<32x32xbf16>
    %66 = vector.extract_strided_slice %50 {offsets = [7, 0], sizes = [32, 32], strides = [1, 1]} : vector<48x128xf32> to vector<32x32xf32>
    %67 = arith.truncf %66 : vector<32x32xf32> to vector<32x32xbf16>
    %c0_24 = arith.constant 0 : index
    %c3_25 = arith.constant 3 : index
    %68 = vector.load %arg7[%c0_24, %c3_25] : memref<32x16xbf16, #tpu.memory_space<vmem>>, vector<32x1xbf16>
    %69 = vector.broadcast %68 : vector<32x1xbf16> to vector<32x32xbf16>
    %70 = arith.mulf %67, %69 : vector<32x32xbf16>
    %71 = vector.extract_strided_slice %50 {offsets = [8, 0], sizes = [32, 32], strides = [1, 1]} : vector<48x128xf32> to vector<32x32xf32>
    %72 = arith.truncf %71 : vector<32x32xf32> to vector<32x32xbf16>
    %73 = vector.extract_strided_slice %50 {offsets = [9, 0], sizes = [32, 32], strides = [1, 1]} : vector<48x128xf32> to vector<32x32xf32>
    %74 = arith.truncf %73 : vector<32x32xf32> to vector<32x32xbf16>
    %c0_26 = arith.constant 0 : index
    %c5 = arith.constant 5 : index
    %75 = vector.load %arg7[%c0_26, %c5] : memref<32x16xbf16, #tpu.memory_space<vmem>>, vector<32x1xbf16>
    %76 = vector.broadcast %75 : vector<32x1xbf16> to vector<32x32xbf16>
    %77 = arith.mulf %74, %76 : vector<32x32xbf16>
    %78 = vector.extract_strided_slice %50 {offsets = [11, 0], sizes = [32, 32], strides = [1, 1]} : vector<48x128xf32> to vector<32x32xf32>
    %79 = arith.truncf %78 : vector<32x32xf32> to vector<32x32xbf16>
    %c0_27 = arith.constant 0 : index
    %c6_28 = arith.constant 6 : index
    %80 = vector.load %arg7[%c0_27, %c6_28] : memref<32x16xbf16, #tpu.memory_space<vmem>>, vector<32x1xbf16>
    %81 = vector.broadcast %80 : vector<32x1xbf16> to vector<32x32xbf16>
    %82 = arith.mulf %79, %81 : vector<32x32xbf16>
    %83 = vector.extract_strided_slice %50 {offsets = [12, 0], sizes = [32, 32], strides = [1, 1]} : vector<48x128xf32> to vector<32x32xf32>
    %84 = arith.truncf %83 : vector<32x32xf32> to vector<32x32xbf16>
    %c0_29 = arith.constant 0 : index
    %c7 = arith.constant 7 : index
    %85 = vector.load %arg7[%c0_29, %c7] : memref<32x16xbf16, #tpu.memory_space<vmem>>, vector<32x1xbf16>
    %86 = vector.broadcast %85 : vector<32x1xbf16> to vector<32x32xbf16>
    %87 = arith.mulf %84, %86 : vector<32x32xbf16>
    %88 = vector.extract_strided_slice %50 {offsets = [13, 0], sizes = [32, 32], strides = [1, 1]} : vector<48x128xf32> to vector<32x32xf32>
    %89 = arith.truncf %88 : vector<32x32xf32> to vector<32x32xbf16>
    %c0_30 = arith.constant 0 : index
    %c8 = arith.constant 8 : index
    %90 = vector.load %arg7[%c0_30, %c8] : memref<32x16xbf16, #tpu.memory_space<vmem>>, vector<32x1xbf16>
    %91 = vector.broadcast %90 : vector<32x1xbf16> to vector<32x32xbf16>
    %92 = arith.mulf %89, %91 : vector<32x32xbf16>
    %93 = vector.extract_strided_slice %48 {offsets = [0, 32], sizes = [32, 16], strides = [1, 1]} : vector<32x128xf32> to vector<32x16xf32>
    %94 = arith.truncf %93 : vector<32x16xf32> to vector<32x16xbf16>
    %95 = tpu.concatenate %55, %60, %65, %70, %72, %77, %82, %87, %92, %94 in 1 : vector<32x32xbf16>, vector<32x32xbf16>, vector<32x32xbf16>, vector<32x32xbf16>, vector<32x32xbf16>, vector<32x32xbf16>, vector<32x32xbf16>, vector<32x32xbf16>, vector<32x32xbf16>, vector<32x16xbf16> -> vector<32x304xbf16>
    %c0_31 = arith.constant 0 : index
    %c0_32 = arith.constant 0 : index
    %96 = vector.load %arg5[%c0_31, %c0_32] : memref<304x128xbf16, #tpu.memory_space<vmem>>, vector<304x128xbf16>
    %cst_33 = arith.constant dense<0.000000e+00> : vector<32x128xf32>
    %97 = tpu.matmul %95, %96, %cst_33 {dimension_numbers = #tpu.dot_dimension_numbers<[1], [0], [0], [1], [0, 0, 1, 1], [], []>} : vector<32x304xbf16>, vector<304x128xbf16>, vector<32x128xf32> -> vector<32x128xf32>
    %98 = arith.addf %97, %8 : vector<32x128xf32>
    %cst_34 = arith.constant 0.000000e+00 : f32
    %99 = vector.broadcast %cst_34 : f32 to vector<32x128xf32>
    %100 = arith.maximumf %98, %99 : vector<32x128xf32>
    %c0_35 = arith.constant 0 : index
    %c0_36 = arith.constant 0 : index
    %101 = vector.load %arg8[%c0_35, %c0_36] : memref<32x128xf32, #tpu.memory_space<vmem>>, vector<32x128xf32>
    tpu.vector_store %arg8[%c0_35, %c0_36], %100 {strides = array<i32>} : memref<32x128xf32, #tpu.memory_space<vmem>>, vector<32x128xf32>,
    return
  }
  func.func @transform_0(%arg0: i32) -> (i32, i32) {
    %c0_i32 = arith.constant 0 : i32
    %c0_i32_0 = arith.constant 0 : i32
    %c0_i32_1 = arith.constant 0 : i32
    return %c0_i32, %c0_i32_0 : i32, i32
  }
  func.func @transform_1(%arg0: i32) -> (i32, i32) {
    %c0_i32 = arith.constant 0 : i32
    %c0_i32_0 = arith.constant 0 : i32
    %c0_i32_1 = arith.constant 0 : i32
    return %c0_i32, %c0_i32_0 : i32, i32
  }
  func.func @transform_2(%arg0: i32) -> (i32, i32) {
    %c0_i32 = arith.constant 0 : i32
    %c0_i32_0 = arith.constant 0 : i32
    %c0_i32_1 = arith.constant 0 : i32
    return %c0_i32, %c0_i32_0 : i32, i32
  }
  func.func @transform_3(%arg0: i32) -> (i32, i32) {
    %c0_i32 = arith.constant 0 : i32
    %c0_i32_0 = arith.constant 0 : i32
    %c0_i32_1 = arith.constant 0 : i32
    return %c0_i32, %c0_i32_0 : i32, i32
  }
  func.func @transform_4(%arg0: i32) -> (i32, i32) {
    %c0_i32 = arith.constant 0 : i32
    %c0_i32_0 = arith.constant 0 : i32
    %c0_i32_1 = arith.constant 0 : i32
    return %c0_i32, %c0_i32_0 : i32, i32
  }
  func.func @transform_5(%arg0: i32) -> (i32, i32) {
    %c0_i32 = arith.constant 0 : i32
    %c0_i32_0 = arith.constant 0 : i32
    %c0_i32_1 = arith.constant 0 : i32
    return %c0_i32, %c0_i32_0 : i32, i32
  }
  func.func @transform_6(%arg0: i32) -> (i32, i32) {
    %c0_i32 = arith.constant 0 : i32
    %c0_i32_0 = arith.constant 0 : i32
    %c0_i32_1 = arith.constant 0 : i32
    return %c0_i32, %c0_i32_0 : i32, i32
  }
  func.func @transform_7(%arg0: i32) -> (i32, i32) {
    %c0_i32 = arith.constant 0 : i32
    %c0_i32_0 = arith.constant 0 : i32
    %c0_i32_1 = arith.constant 0 : i32
    return %c0_i32, %c0_i32_0 : i32, i32
  }
}

</mosaic_0001>

<bundles_post_ra>
// kernel: resnet_vision_tower_forward.1
= control target key start
LH: loop header
LB: loop body
LE: loop exit
PB: predicated region body
PF: predicated region fallthrough
CT: control target
= control target key end

     0   :  { %vm100_vm0 = vcmask 261120   ;;  %v2539_v3 = vmov 1   ;;  %v2540_v6 = vmov 0   ;;  %v2541_v13 = vmov 2   ;;  %s3269_s0 = inlined_call_operand.vmem [shape: bf16[128,32], index: 0, kind: input, shape index: {}]   ;;  %s3270_s1 = inlined_call_operand.vmem [shape: bf16[32,128], index: 1, kind: input, shape index: {}]   ;;  %s3271_s2 = inlined_call_operand.vmem [shape: bf16[160,128], index: 2, kind: input, shape index: {}]   ;;  %s3272_s3 = inlined_call_operand.vmem [shape: bf16[32,128], index: 3, kind: input, shape index: {}]   ;;  %s3273_s4 = inlined_call_operand.vmem [shape: bf16[304,128], index: 4, kind: input, shape index: {}]   ;;  %s3274_s5 = inlined_call_operand.vmem [shape: bf16[32,16], index: 5, kind: input, shape index: {}]   ;;  %s3275_s6 = inlined_call_operand.vmem [shape: bf16[32,16], index: 6, kind: input, shape index: {}]   ;;  %s3276_s7 = inlined_call_operand.hbm [shape: f32[32,128], index: 7, kind: output, shape index: {}]  }
   0x1   :  { %v2474_v0 = vld [vmem:[%s3270_s1] sm:$0xff]   ;;  %v2475_v1 = vld [vmem:[%s3270_s1 + $0x8] sm:$0xff]   ;;  %2448 = vset.pattern.permute.xlu1 %v2539_v3  ;;  %2447 = vset.pattern.permute.xlu0 %v2539_v3  ;;  %v2478_v5 = vld [vmem:[%s3269_s0 + $0x10] sm:$0xff]   ;;  %v2542_v17 = vmov 3  }
   0x2   :  { %2381 = vmatprep.subr.bf16.mxu0 %v2474_v0  ;;  %v2476_v2 = vld [vmem:[%s3269_s0] sm:$0xff]   ;;  %v2477_v4 = vld [vmem:[%s3269_s0 + $0x8] sm:$0xff]   ;;  %v2479_v11 = vld [vmem:[%s3269_s0 + $0x18] sm:$0xff]  }
   0x3   :  { %2382 = vmatpush3.bf16.msra.mxu0 %v2474_v0  ;;  %2385 = vmatprep.mubr.msk.bf16.mxu0 %vm100_vm0, %v2476_v2  ;;  %v316_v7 = vld [vmem:[%s3274_s5 + $0x8] sm:$0xf]  ;;  %v314_v8 = vld [vmem:[%s3274_s5] sm:$0xf]  ;;  %v317_v9 = vld [vmem:[%s3274_s5 + $0xc] sm:$0xf] }
   0x4   :  { %2383 = vmatprep.subr.bf16.mxu0 %v2475_v1  ;;  %426 = vperm.xlu1 %2448, %v316_v7   ;;  %v315_v10 = vld [vmem:[%s3274_s5 + $0x4] sm:$0xf]  ;;  %v2481_v14 = vld [vmem:[%s3269_s0 + $0x28] sm:$0xff]   ;;  %v2482_v15 = vld [vmem:[%s3269_s0 + $0x30] sm:$0xff]  }
   0x5   :  { %404 = vperm.xlu0 %2447, %v314_v8   ;;  %v2480_v12 = vld [vmem:[%s3269_s0 + $0x20] sm:$0xff]   ;;  %v2483_v16 = vld [vmem:[%s3269_s0 + $0x38] sm:$0xff]  }
   0x7   :  { %2384 = vmatpush3.bf16.msra.mxu0 %v2475_v1 }
   0x8   :  { %1061 = vmatprep.subr.bf16.mxu0 %v2540_v6  ;;  %437 = vperm.xlu1 %2448, %v317_v9  }
   0x9   :  { %415 = vperm.xlu0 %2447, %v315_v10  }
   0xa   :  { %2386 = vmatmul.mubr.msk.bf16.vlgmr.msra.gmra.mrb[0].mxu0 %vm100_vm0, %v2477_v4 }
   0xb   :  { %2389 = vmatprep.mubr.msk.bf16.mxu0 %vm100_vm0, %v2478_v5 }
   0xc   :  { %2450 = vset.pattern.permute.xlu1 %v2541_v13 }
   0xd   :  { %479 = vperm.xlu1 %2450, %v315_v10   ;;  %2449 = vset.pattern.permute.xlu0 %v2541_v13 }
   0xe   :  { %468 = vperm.xlu0 %2449, %v314_v8  }
  0x11   :  { %490 = vperm.xlu1 %2450, %v316_v7  }
  0x12   :  { %2390 = vmatmul.mubr.msk.bf16.gmra.mrb[4].mxu0 %vm100_vm0, %v2479_v11  ;;  %501 = vperm.xlu0 %2449, %v317_v9  }
  0x13   :  { %2393 = vmatprep.mubr.msk.bf16.mxu0 %vm100_vm0, %v2480_v12 }
  0x15   :  { %2451 = vset.pattern.permute.xlu1 %v2542_v17 }
  0x16   :  { %534 = vperm.xlu1 %2451, %v314_v8   ;;  %2452 = vset.pattern.permute.xlu0 %v2542_v17 }
  0x17   :  { %545 = vperm.xlu0 %2452, %v315_v10  }
  0x1a   :  { %2394 = vmatmul.mubr.msk.bf16.gmra.mrb[8].mxu0 %vm100_vm0, %v2481_v14 }
  0x1b   :  { %2397 = vmatprep.mubr.msk.bf16.mxu0 %vm100_vm0, %v2482_v15 }
  0x1c   :  { %12 = vsyncpa [#allocation3], 0  ;;  %556 = vperm.xlu1 %2451, %v316_v7   ;;  %v2543_v18 = vmov 6   ;;  %v2484_v19 = vld [vmem:[%s3272_s3] sm:$0xff]   ;;  %v2485_v20 = vld [vmem:[%s3272_s3 + $0x8] sm:$0xff]   ;;  %v326_v31 = vlaneseq  ;;  %vm457_vm1 = vcmask 1041408  }
  0x1d   :  { %2453 = vset.pattern.permute.xlu0 %v2543_v18  ;;  %2401 = vmatprep.subr.bf16.mxu1 %v2484_v19  ;;  %v2544_v29 = vmov 839922192   ;;  %v2486_v5 = vld [vmem:[%s3271_s2] sm:$0xff]   ;;  %vm587_vm2 = vsmask.f32 3328  ;;  %vm756_vm4 = vcmask 1045504  }
  0x1e   :  { %614 = vperm.xlu0 %2453, %v314_v8   ;;  %2402 = vmatpush3.bf16.msra.mxu1 %v2484_v19  ;;  %v324_v30 = vunpack.c.l.s4 %v2544_v29  ;;  %v327_v35 = vshrl.u32 %v326_v31, 7  ;;  %vm376_vm3 = vsmask.f32 1280  ;;  %s2545_s13 = smov 64   ;;  %s2546_s16 = smov 48   ;;  %vm866_vm6 = vcmask 130048  }
  0x1f   :  { %2403 = vmatprep.subr.bf16.mxu1 %v2485_v20  ;;  %1062 = vmatpush1.bf16.msra.mxu0 %v2486_v5  ;;  %vm694_vm5 = vsmask.f32 7424  ;;  %s2547_s19 = smov 80   ;;  %s2548_s22 = smov 112   ;;  %vm946_vm7 = vsmask.f32 6400 }
  0x20   :  { %567 = vperm.xlu1 %2451, %v317_v9   ;;  %v325_v34 = vunpack.c.0.s8 %v324_v30  ;;  %1063 = vmatprep.subr.bf16.mxu0 %v2540_v6  ;;  %s2549_s24 = smov 16   ;;  %s2550_s0 = smov 96   ;;  %vm882_vm8 = vcmask 392192   ;;  %vm889_vm9 = vcmask 523264   ;;  %vm896_vm10 = vcmask 654336  }
  0x21   :  { %s2551_s29 = smov 32   ;;  %vm903_vm11 = vcmask 785408   ;;  %vm910_vm12 = vcmask 916480   ;;  %vm1477_vm13 = vsmask.f32 256  ;;  %vm1748_vm15 = vcmask 1046528  }
  0x22   :  { %2398 = vmatmul.mubr.msk.bf16.gmra.mrb[12].mxu0 %vm100_vm0, %v2483_v16  ;;  %647 = vperm.xlu0 %2453, %v317_v9   ;;  %v2671_v38 = vsub.s32 %v325_v34, %v327_v35  ;;  %vm1319_vm14 = vsmask.f32 2304 }
  0x23   :  { %2404 = vmatpush3.bf16.msra.mxu1 %v2485_v20 }
  0x24   :  { %2454 = vset.pattern.permute.xlu1 %v2543_v18 }
  0x25   :  { %625 = vperm.xlu1 %2454, %v315_v10  }
  0x26   :  { %2456 = vset.pattern.permute.xlu0 %v2540_v6 }
  0x27   :  { %332 = vperm.xlu0 %2456, %v315_v10  }
  0x29   :  { %636 = vperm.xlu1 %2454, %v316_v7  }
  0x2b   :  { %2459 = vset.pattern.permute.xlu0 %v2539_v3 }
  0x2d   :  { %2455 = vset.pattern.permute.xlu1 %v2540_v6 }
  0x2e   :  { %320 = vperm.xlu1 %2455, %v314_v8  }
  0x32   :  { %344 = vperm.xlu1 %2455, %v316_v7  }
  0x36   :  { %356 = vperm.xlu1 %2455, %v317_v9  }
  0x83   :  { %v427_v21 = vpop.permute.xlu1 %426 }
  0x84   :  { %v405_v24 = vpop.permute.xlu0 %404  ;;  %v435_v45 = vrot.slane %v427_v21, %v2671_v38 }
  0x85   :  { %v413_v46 = vrot.slane %v405_v24, %v2671_v38 }
  0x87   :  { %v438_v22 = vpop.permute.xlu1 %437 }
  0x88   :  { %v416_v26 = vpop.permute.xlu0 %415  ;;  %v446_v47 = vrot.slane %v438_v22, %v2671_v38 }
  0x89   :  { %v424_v48 = vrot.slane %v416_v26, %v2671_v38 }
  0x8a   :  { %v2683_v53 = vcombine.low %v435_v45, %v446_v47 }
  0x8b   :  { %v2685_v54 = vcombine.low %v413_v46, %v424_v48 }
  0x8c   :  { %v480_v23 = vpop.permute.xlu1 %479  ;;  %v459_v7 = vrot.slane %v2683_v53, 6 }
  0x8d   :  { %v469_v28 = vpop.permute.xlu0 %468  ;;  %v488_v55 = vrot.slane %v480_v23, %v2671_v38  ;;  %v458_v8 = vrot.slane %v2685_v54, 6 }
  0x8e   :  { %v477_v56 = vrot.slane %v469_v28, %v2671_v38 }
  0x8f   :  { %v2709_v31 = vsel %vm457_vm1, %v458_v8, %v459_v7 }
  0x90   :  { %v2667_v25 = vpop.permute.xlu1 %490  ;;  %v2696_v9 = vcombine.low %v477_v56, %v488_v55 }
  0x91   :  { %v2669_v33 = vpop.permute.xlu0 %501  ;;  %v499_v10 = vrot.slane %v2667_v25, %v2671_v38 }
  0x92   :  { %v510_v12 = vrot.slane %v2669_v33, %v2671_v38  ;;  %v521_v28 = vrot.slane %v2696_v9, 6 }
  0x95   :  { %v535_v27 = vpop.permute.xlu1 %534 }
  0x96   :  { %v546_v37 = vpop.permute.xlu0 %545  ;;  %v543_v39 = vrot.slane %v535_v27, %v2671_v38 }
  0x97   :  { %v554_v40 = vrot.slane %v546_v37, %v2671_v38 }
  0x99   :  { %v2281_v49 = vcombine.low %v543_v39, %v554_v40 }
  0x9b   :  { %v557_v32 = vpop.permute.xlu1 %556  ;;  %v589_v61 = vshrl.u32 %v2281_v49, 16  ;;  %v592_v62 = vshll.u32 %v2281_v49, 16 }
  0x9c   :  { %v565_v43 = vrot.slane %v557_v32, %v2671_v38  ;;  %v2711_v32 = vcombine.low %v499_v10, %v510_v12  ;;  %v2489_v10 = vld [vmem:[%s3271_s2 + $0x18] sm:$0xff]  }
  0x9d   :  { %v615_v42 = vpop.permute.xlu0 %614  ;;  %v591_v20 = vrot.slane %v589_v61, 4  ;;  %v594_v21 = vrot.slane %v592_v62, 5 }
  0x9e   :  { %v623_v52 = vrot.slane %v615_v42, %v2671_v38 }
  0x9f   :  { %v568_v36 = vpop.permute.xlu1 %567  ;;  %v595_v39 = vor.u32 %v594_v21, %v591_v20 }
  0xa0   :  { %v576_v44 = vrot.slane %v568_v36, %v2671_v38  ;;  %v2487_v36 = vld [vmem:[%s3271_s2 + $0x8] sm:$0xff]  }
  0xa1   :  { %v648_v58 = vpop.permute.xlu0 %647  ;;  %1064 = vmatpush1.bf16.msra.mxu0 %v2487_v36 }
  0xa2   :  { %v2282_v50 = vcombine.low %v565_v43, %v576_v44  ;;  %v656_v60 = vrot.slane %v648_v58, %v2671_v38  ;;  %1065 = vmatprep.subr.bf16.mxu0 %v2540_v6 }
  0xa4   :  { %v626_v41 = vpop.permute.xlu1 %625  ;;  %v597_v0 = vshrl.u32 %v2282_v50, 16  ;;  %v600_v1 = vshll.u32 %v2282_v50, 16 }
  0xa5   :  { %v634_v51 = vrot.slane %v626_v41, %v2671_v38 }
  0xa6   :  { %v599_v24 = vrot.slane %v597_v0, 4  ;;  %v602_v26 = vrot.slane %v600_v1, 5  ;;  %v522_v1 = vrot.slane %v2711_v32, 6 }
  0xa7   :  { %v2283_v4 = vcombine.low %v623_v52, %v634_v51 }
  0xa8   :  { %v637_v57 = vpop.permute.xlu1 %636  ;;  %v603_v43 = vor.u32 %v602_v26, %v599_v24 }
  0xa9   :  { %v645_v59 = vrot.slane %v637_v57, %v2671_v38  ;;  %v668_v27 = vshrl.u32 %v2283_v4, 16  ;;  %v671_v30 = vshll.u32 %v2283_v4, 16 }
  0xaa   :  { %v604_v5 = vsel %vm587_vm2, %v595_v39, %v603_v43 }
  0xab   :  { %v2284_v19 = vcombine.low %v645_v59, %v656_v60  ;;  %v670_v47 = vrot.slane %v668_v27, 4  ;;  %v673_v50 = vrot.slane %v671_v30, 5  ;;  %v2488_v60 = vld [vmem:[%s3271_s2 + $0x10] sm:$0xff]  }
  0xac   :  { %1066 = vmatpush1.bf16.msra.mxu0 %v2488_v60 }
  0xad   :  { %v676_v35 = vshrl.u32 %v2284_v19, 16  ;;  %v679_v42 = vshll.u32 %v2284_v19, 16  ;;  %v2738_v20 = vor.u32 %v673_v50, %v670_v47  ;;  %1067 = vmatprep.subr.bf16.mxu0 %v2540_v6 }
  0xaf   :  { %v678_v58 = vrot.slane %v676_v35, 4  ;;  %v681_v0 = vrot.slane %v679_v42, 5 }
  0xb0   :  { %1068 = vmatpush1.bf16.msra.mxu0 %v2489_v10 }
  0xb1   :  { %v2745_v26 = vor.u32 %v681_v0, %v678_v58  ;;  %1069 = vmatprep.subr.bf16.mxu0 %v2540_v6 }
  0xb3   :  { %v2772_v60 = vsel %vm587_vm2, %v2738_v20, %v2745_v26 }
  0xdd   :  { %v2387_v63 = vpop.f32.mrb[0].mxu0 }
  0xde   :  { %v159_v2 = vpop.f32.mrb[1].mxu0  ;;  %v224_v14 = vmax.f32 %v2387_v63, 0.0 }
  0xdf   :  { %v2388_v11 = vpop.f32.mrb[2].mxu0  ;;  %v222_v22 = vmax.f32 %v159_v2, 0.0 }
  0xe0   :  { %v225_v15 = vmax.f32 %v2388_v11, 0.0  ;;  %v162_v16 = vpop.f32.mrb[3].mxu0 }
  0xe1   :  { %v223_v23 = vmax.f32 %v162_v16, 0.0 }
  0xe2   :  { %v239_v25 = vpack.c.bf16 %v225_v15, %v224_v14 }
  0xe3   :  { %v238_v29 = vpack.c.bf16 %v223_v23, %v222_v22 }
  0xe4   :  { %v775_v33 = vshrl.u32 %v239_v25, 16  ;;  %v778_v34 = vshll.u32 %v239_v25, 16 }
  0xe5   :  { %v2391_v37 = vpop.f32.mrb[4].mxu0  ;;  %2405 = vmatprep.mubr.msk.bf16.mxu1 %vm100_vm0, %v238_v29  ;;  %v768_v40 = vshrl.u32 %v238_v29, 16  ;;  %v771_v41 = vshll.u32 %v238_v29, 16 }
  0xe6   :  { %v777_v44 = vrot.slane %v775_v33, 6  ;;  %v780_v45 = vrot.slane %v778_v34, 7  ;;  %v175_v46 = vpop.f32.mrb[5].mxu0  ;;  %2406 = vmatmul.mubr.msk.bf16.vlgmr.msra.gmra.mrb[0].mxu1 %vm100_vm0, %v239_v25  ;;  %v228_v55 = vmax.f32 %v2391_v37, 0.0 }
  0xe7   :  { %v226_v48 = vmax.f32 %v175_v46, 0.0  ;;  %v2392_v49 = vpop.f32.mrb[6].mxu0  ;;  %v770_v51 = vrot.slane %v768_v40, 6  ;;  %v773_v52 = vrot.slane %v771_v41, 7  ;;  %v2754_v41 = vsel %vm457_vm1, %v521_v28, %v522_v1  ;;  %v2490_v46 = vld [vmem:[%s3271_s2 + $0x20] sm:$0xff]  }
  0xe8   :  { %v229_v56 = vmax.f32 %v2392_v49, 0.0  ;;  %v178_v57 = vpop.f32.mrb[7].mxu0  ;;  %v2719_v59 = vor.u32 %v780_v45, %v777_v44  ;;  %1070 = vmatpush1.bf16.msra.mxu0 %v2490_v46 }
  0xe9   :  { %v530_v61 = vpack.c.bf16 %v226_v48, %v225_v15  ;;  %v227_v62 = vmax.f32 %v178_v57, 0.0  ;;  %v2724_v63 = vor.u32 %v773_v52, %v770_v51  ;;  %1071 = vmatprep.subr.bf16.mxu0 %v2540_v6 }
  0xea   :  { %v532_v2 = vpack.c.bf16 %v229_v56, %v229_v56  ;;  %v612_v4 = vpack.c.bf16 %v229_v56, %v228_v55 }
  0xeb   :  { %v608_v11 = vmul.bf16 %v595_v39, %v530_v61  ;;  %v531_v12 = vpack.c.bf16 %v228_v55, %v227_v62  ;;  %v611_v14 = vpack.c.bf16 %v227_v62, %v226_v48  ;;  %783 = vrot.lane.b32.xlu0 %v2724_v63, %s2545_s13  ;;  %v2736_v15 = vsel %vm376_vm3, %v2724_v63, %v2719_v59 }
  0xec   :  { %v798_v16 = vshrl.u32 %v612_v4, 16  ;;  %v801_v19 = vshll.u32 %v612_v4, 16  ;;  %785 = vrot.lane.b32.xlu1 %v2736_v15, %s2545_s13  ;;  %v2742_v21 = vmul.bf16 %v603_v43, %v532_v2 }
  0xed   :  { %v609_v22 = vmul.bf16 %v604_v5, %v531_v12  ;;  %v790_v23 = vshrl.u32 %v611_v14, 16  ;;  %v793_v24 = vshll.u32 %v611_v14, 16  ;;  %v2395_v25 = vpop.f32.mrb[8].mxu0  ;;  %v757_v27 = vrot.slane %v608_v11, 2  ;;  %v2491_v11 = vld [vmem:[%s3271_s2 + $0x28] sm:$0xff]  }
  0xee   :  { %v800_v29 = vrot.slane %v798_v16, 6  ;;  %v803_v30 = vrot.slane %v801_v19, 7  ;;  %v191_v33 = vpop.f32.mrb[9].mxu0  ;;  %v760_v34 = vrot.slane %v2742_v21, 2  ;;  %v232_v42 = vmax.f32 %v2395_v25, 0.0  ;;  %1072 = vmatpush1.bf16.msra.mxu0 %v2491_v11 }
  0xef   :  { %v758_v35 = vrot.slane %v609_v22, 2  ;;  %v792_v36 = vrot.slane %v790_v23, 6  ;;  %v795_v37 = vrot.slane %v793_v24, 7  ;;  %v230_v39 = vmax.f32 %v191_v33, 0.0  ;;  %v2396_v40 = vpop.f32.mrb[10].mxu0  ;;  %1073 = vmatprep.subr.bf16.mxu0 %v2540_v6 }
  0xf0   :  { %v233_v43 = vmax.f32 %v2396_v40, 0.0  ;;  %v194_v44 = vpop.f32.mrb[11].mxu0  ;;  %v2756_v45 = vor.u32 %v803_v30, %v800_v29  ;;  %v1118_v21 = vld [vmem:[%s3275_s6 + $0x4] sm:$0xf] }
  0xf1   :  { %v400_v47 = vpack.c.bf16 %v230_v39, %v229_v56  ;;  %v231_v48 = vmax.f32 %v194_v44, 0.0  ;;  %v761_v49 = vsel %vm756_vm4, %v758_v35, %v760_v34  ;;  %v759_v50 = vsel %vm756_vm4, %v757_v27, %v758_v35  ;;  %v2492_v35 = vld [vmem:[%s3271_s2 + $0x30] sm:$0xff]  }
  0xf2   :  { %v402_v51 = vpack.c.bf16 %v233_v43, %v233_v43  ;;  %v691_v52 = vpack.c.bf16 %v233_v43, %v232_v42  ;;  %764 = vrot.lane.b32.xlu1 %v761_v49, %s2546_s16  ;;  %762 = vrot.lane.b32.xlu0 %v759_v50, %s2546_s16  ;;  %v796_v55 = vor.u32 %v795_v37, %v792_v36 }
  0xf3   :  { %v464_v57 = vmul.bf16 %v458_v8, %v400_v47  ;;  %v401_v56 = vpack.c.bf16 %v232_v42, %v231_v48  ;;  %v690_v58 = vpack.c.bf16 %v231_v48, %v230_v39  ;;  %1074 = vmatpush1.bf16.msra.mxu0 %v2492_v35 }
  0xf4   :  { %v2776_v61 = vmul.bf16 %v459_v7, %v402_v51  ;;  %v835_v62 = vshrl.u32 %v691_v52, 16  ;;  %v838_v0 = vshll.u32 %v691_v52, 16  ;;  %v805_v2 = vsel %vm376_vm3, %v796_v55, %v2756_v45  ;;  %1075 = vmatprep.subr.bf16.mxu0 %v2540_v6 }
  0xf5   :  { %v696_v54 = vshrl.u32 %v464_v57, 16  ;;  %v698_v8 = vshll.u32 %v464_v57, 16  ;;  %v465_v4 = vmul.bf16 %v2709_v31, %v401_v56  ;;  %v827_v5 = vshrl.u32 %v690_v58, 16  ;;  %v2399_v10 = vpop.f32.mrb[12].mxu0 }
  0xf6   :  { %v837_v53 = vrot.slane %v835_v62, 6  ;;  %v840_v7 = vrot.slane %v838_v0, 7  ;;  %v830_v12 = vshll.u32 %v690_v58, 16  ;;  %v236_v14 = vmax.f32 %v2399_v10, 0.0  ;;  %808 = vrot.lane.b32.xlu1 %v805_v2, %s2547_s19  ;;  %806 = vrot.lane.b32.xlu0 %v796_v55, %s2547_s19  ;;  %v207_v16 = vpop.f32.mrb[13].mxu0 }
  0xf7   :  { %v700_v19 = vrot.slane %v698_v8, 1  ;;  %v703_v22 = vshll.u32 %v465_v4, 16  ;;  %v707_v23 = vshrl.u32 %v465_v4, 16  ;;  %v829_v31 = vrot.slane %v827_v5, 6  ;;  %v2400_v24 = vpop.f32.mrb[14].mxu0  ;;  %v2493_v4 = vld [vmem:[%s3271_s2 + $0x38] sm:$0xff]  }
  0xf8   :  { %v832_v25 = vrot.slane %v830_v12, 7  ;;  %v234_v27 = vmax.f32 %v207_v16, 0.0  ;;  %v237_v29 = vmax.f32 %v2400_v24, 0.0  ;;  %v210_v30 = vpop.f32.mrb[15].mxu0  ;;  %v2787_v33 = vor.u32 %v840_v7, %v837_v53  ;;  %1076 = vmatpush1.bf16.msra.mxu0 %v2493_v4  ;;  %v333_v4 = vpop.permute.xlu0 %332 }
  0xf9   :  { %v235_v36 = vmax.f32 %v210_v30, 0.0  ;;  %v701_v37 = vor.u32 %v700_v19, %v696_v54  ;;  %v705_v39 = vrot.slane %v703_v22, 1  ;;  %v711_v40 = vshll.u32 %v2776_v61, 16  ;;  %1077 = vmatprep.subr.bf16.mxu0 %v2540_v6 }
  0xfa   :  { %v2794_v42 = vpack.c.bf16 %v234_v27, %v233_v43  ;;  %v2796_v44 = vpack.c.bf16 %v237_v29, %v237_v29  ;;  %v693_v46 = vpack.c.bf16 %v237_v29, %v236_v14  ;;  %v833_v47 = vor.u32 %v832_v25, %v829_v31 }
  0xfb   :  { %v2798_v48 = vpack.c.bf16 %v236_v14, %v235_v36  ;;  %v692_v49 = vpack.c.bf16 %v235_v36, %v234_v27  ;;  %v706_v50 = vsel %vm694_vm5, %v701_v37, %v705_v39  ;;  %v709_v51 = vor.u32 %v707_v23, %v705_v39  ;;  %v2495_v37 = vld [vmem:[%s3271_s2 + $0x48] sm:$0xff]  }
  0xfc   :  { %v527_v52 = vmul.bf16 %v521_v28, %v2794_v42  ;;  %v2807_v43 = vmul.bf16 %v522_v1, %v2796_v44  ;;  %v858_v55 = vshrl.u32 %v693_v46, 16  ;;  %v861_v57 = vshll.u32 %v693_v46, 16  ;;  %843 = vrot.lane.b32.xlu0 %v833_v47, %s2548_s22 }
  0xfd   :  { %v528_v56 = vmul.bf16 %v2754_v41, %v2798_v48  ;;  %v850_v58 = vshrl.u32 %v692_v49, 16  ;;  %v853_v62 = vshll.u32 %v692_v49, 16  ;;  %v842_v9 = vsel %vm376_vm3, %v833_v47, %v2787_v33 }
  0xfe   :  { %v860_v28 = vrot.slane %v858_v55, 6  ;;  %v863_v0 = vrot.slane %v861_v57, 7  ;;  %845 = vrot.lane.b32.xlu1 %v842_v9, %s2548_s22  ;;  %v713_v32 = vrot.slane %v711_v40, 1  ;;  %v687_v1 = vmul.bf16 %v2738_v20, %v2794_v42 }
  0xff   :  { %v852_v2 = vrot.slane %v850_v58, 6  ;;  %v855_v54 = vrot.slane %v853_v62, 7  ;;  %v688_v8 = vmul.bf16 %v2772_v60, %v2798_v48  ;;  %v689_v41 = vmul.bf16 %v2745_v26, %v2796_v44  ;;  %v2494_v26 = vld [vmem:[%s3271_s2 + $0x40] sm:$0xff]  }
 0x100   :  { %v864_v5 = vor.u32 %v863_v0, %v860_v28  ;;  %718 = vrot.lane.b32.xlu0 %v706_v50, %s2549_s24  ;;  %v714_v10 = vsel %vm694_vm5, %v709_v51, %v713_v32  ;;  %v815_v11 = vrot.slane %v687_v1, 2  ;;  %v727_v60 = vshll.u32 %v527_v52, 16  ;;  %1078 = vmatpush1.bf16.msra.mxu0 %v2494_v26 }
 0x101   :  { %v856_v20 = vor.u32 %v855_v54, %v852_v2  ;;  %v816_v53 = vrot.slane %v688_v8, 2  ;;  %v2827_v7 = vrot.slane %v689_v41, 2  ;;  %v725_v12 = vshrl.u32 %v527_v52, 16  ;;  %1079 = vmatprep.subr.bf16.mxu0 %v2540_v6  ;;  %v2876_v41 = vld [vmem:[%s3275_s6 + $0x8] sm:$0xf] }
 0x102   :  { %720 = vrot.lane.b32.xlu1 %v714_v10, %s2549_s24  ;;  %v732_v14 = vshll.u32 %v528_v56, 16  ;;  %v740_v16 = vshll.u32 %v2807_v43, 16  ;;  %v729_v31 = vrot.slane %v727_v60, 1  ;;  %v736_v25 = vshrl.u32 %v528_v56, 16 }
 0x103   :  { %v865_v19 = vsel %vm376_vm3, %v856_v20, %v864_v5  ;;  %v817_v22 = vsel %vm756_vm4, %v815_v11, %v816_v53  ;;  %v819_v23 = vsel %vm756_vm4, %v816_v53, %v2827_v7  ;;  %v919_v27 = vsel %vm866_vm6, %v856_v20, %v2724_v63 }
 0x104   :  { %820 = vrot.lane.b32.xlu0 %v817_v22, %s2550_s0  ;;  %v734_v24 = vrot.slane %v732_v14, 1  ;;  %v730_v29 = vor.u32 %v729_v31, %v725_v12  ;;  %v922_v30 = vsel %vm866_vm6, %v865_v19, %v2736_v15  ;;  %v962_v35 = vshrl.u32 %v919_v27, 16  ;;  %1080 = vmatpush1.bf16.msra.mxu0 %v2495_v37 }
 0x105   :  { %v965_v36 = vshll.u32 %v919_v27, 16  ;;  %v742_v40 = vrot.slane %v740_v16, 1  ;;  %v969_v46 = vshrl.u32 %v922_v30, 16  ;;  %v972_v47 = vshll.u32 %v922_v30, 16 }
 0x106   :  { %822 = vrot.lane.b32.xlu1 %v819_v23, %s2550_s0  ;;  %v738_v39 = vor.u32 %v736_v25, %v734_v24  ;;  %v735_v63 = vsel %vm694_vm5, %v730_v29, %v734_v24  ;;  %v964_v49 = vrot.slane %v962_v35, 1  ;;  %v715_v51 = vshrl.u32 %v2776_v61, 16 }
 0x107   :  { %v967_v50 = vrot.slane %v965_v36, 2  ;;  %v971_v52 = vrot.slane %v969_v46, 1  ;;  %v974_v55 = vrot.slane %v972_v47, 2  ;;  %v744_v62 = vshrl.u32 %v2807_v43, 16 }
 0x108   :  { %747 = vrot.lane.b32.xlu0 %v735_v63, %s2551_s29  ;;  %v743_v15 = vsel %vm694_vm5, %v738_v39, %v742_v40  ;;  %v717_v56 = vor.u32 %v715_v51, %v713_v32  ;;  %v925_v9 = vsel %vm866_vm6, %v864_v5, %v2719_v59  ;;  %v2552_v61 = vmov 5  }
 0x109   :  { %v968_v57 = vor.u32 %v967_v50, %v964_v49  ;;  %v975_v58 = vor.u32 %v974_v55, %v971_v52  ;;  %v746_v0 = vor.u32 %v744_v62, %v742_v40  ;;  %2457 = vset.pattern.permute.xlu1 %v2552_v61  ;;  %v985_v1 = vshrl.u32 %v925_v9, 16 }
 0x10a   :  { %749 = vrot.lane.b32.xlu1 %v743_v15, %s2551_s29  ;;  %v988_v2 = vshll.u32 %v925_v9, 16  ;;  %v341_v53 = vrot.slane %v333_v4, %v2671_v38 }
 0x10b   :  { %v976_v28 = vsel %vm946_vm7, %v968_v57, %v975_v58  ;;  %v987_v32 = vrot.slane %v985_v1, 1 }
 0x10c   :  { %722 = vrot.lane.b32.xlu0 %v717_v56, %s2549_s24  ;;  %2295 = vmatprep.mubr.msk.bf16.mxu0 %vm100_vm0, %v976_v28  ;;  %v990_v54 = vrot.slane %v988_v2, 2 }
 0x10e   :  { %751 = vrot.lane.b32.xlu1 %v746_v0, %s2551_s29  ;;  %v991_v43 = vor.u32 %v990_v54, %v987_v32 }
 0x110   :  { %766 = vrot.lane.b32.xlu0 %v760_v34, %s2546_s16  ;;  %v2867_v8 = vsel %vm946_vm7, %v975_v58, %v991_v43  ;;  %v2892_v34 = vld [vmem:[%s3275_s6 + $0xc] sm:$0xf] }
 0x112   :  { %787 = vrot.lane.b32.xlu1 %v2719_v59, %s2545_s13  ;;  %v1117_v59 = vld [vmem:[%s3275_s6] sm:$0xf] }
 0x114   :  { %810 = vrot.lane.b32.xlu0 %v2756_v45, %s2547_s19  ;;  %v321_v45 = vpop.permute.xlu1 %320 }
 0x115   :  { %v329_v11 = vrot.slane %v321_v45, %v2671_v38 }
 0x116   :  { %824 = vrot.lane.b32.xlu1 %v2827_v7, %s2550_s0 }
 0x117   :  { %v2275_v26 = vcombine.low %v329_v11, %v341_v53 }
 0x118   :  { %847 = vrot.lane.b32.xlu0 %v2787_v33, %s2548_s22  ;;  %v345_v33 = vpop.permute.xlu1 %344 }
 0x119   :  { %v353_v20 = vrot.slane %v345_v33, %v2671_v38  ;;  %v381_v16 = vshll.u32 %v2275_v26, 16 }
 0x11a   :  { %1446 = vperm.xlu1 %2457, %v2876_v41  }
 0x11b   :  { %v383_v25 = vrot.slane %v381_v16, 7 }
 0x11c   :  { %1225 = vperm.xlu0 %2459, %v2876_v41   ;;  %v357_v5 = vpop.permute.xlu1 %356 }
 0x11e   :  { %2458 = vset.pattern.permute.xlu1 %v2539_v3  ;;  %v2553_v3 = vmov 7  }
 0x11f   :  { %1203 = vperm.xlu1 %2458, %v1117_v59  }
 0x120   :  { %2460 = vset.pattern.permute.xlu0 %v2552_v61 }
 0x121   :  { %1457 = vperm.xlu0 %2460, %v2892_v34  }
 0x123   :  { %1214 = vperm.xlu1 %2458, %v1118_v21  }
 0x125   :  { %1435 = vperm.xlu0 %2460, %v1118_v21  }
 0x127   :  { %1236 = vperm.xlu1 %2458, %v2892_v34  }
 0x129   :  { %2463 = vset.pattern.permute.xlu0 %v2541_v13 }
 0x12a   :  { %1288 = vperm.xlu0 %2463, %v2876_v41  }
 0x12b   :  { %2461 = vset.pattern.permute.xlu1 %v2552_v61 }
 0x12c   :  { %1424 = vperm.xlu1 %2461, %v1117_v59  }
 0x12e   :  { %2465 = vset.pattern.permute.xlu0 %v2553_v3 }
 0x12f   :  { %1588 = vperm.xlu0 %2465, %v1118_v21  }
 0x130   :  { %2462 = vset.pattern.permute.xlu1 %v2541_v13  ;;  %v2554_v13 = vmov 8  }
 0x131   :  { %1266 = vperm.xlu1 %2462, %v1117_v59  }
 0x133   :  { %2466 = vset.pattern.permute.xlu0 %v2542_v17 }
 0x134   :  { %1344 = vperm.xlu0 %2466, %v1117_v59  }
 0x135   :  { %1277 = vperm.xlu1 %2462, %v1118_v21  }
 0x138   :  { %1377 = vperm.xlu0 %2466, %v2892_v34  }
 0x139   :  { %1299 = vperm.xlu1 %2462, %v2892_v34  }
 0x13c   :  { %2469 = vset.pattern.permute.xlu0 %v2543_v18 }
 0x13d   :  { %2464 = vset.pattern.permute.xlu1 %v2553_v3  ;;  %1511 = vperm.xlu0 %2469, %v1118_v21  }
 0x13e   :  { %1577 = vperm.xlu1 %2464, %v1117_v59  }
 0x141   :  { %2470 = vset.pattern.permute.xlu0 %v2540_v6 }
 0x142   :  { %1599 = vperm.xlu1 %2464, %v2876_v41   ;;  %1123 = vperm.xlu0 %2470, %v1117_v59  }
 0x146   :  { %1610 = vperm.xlu1 %2464, %v2892_v34   ;;  %1159 = vperm.xlu0 %2470, %v2892_v34  }
 0x14a   :  { %2467 = vset.pattern.permute.xlu1 %v2542_v17  ;;  %2473 = vset.pattern.permute.xlu0 %v2554_v13 }
 0x14b   :  { %1355 = vperm.xlu1 %2467, %v1118_v21   ;;  %1651 = vperm.xlu0 %2473, %v1118_v21  }
 0x14f   :  { %1366 = vperm.xlu1 %2467, %v2876_v41  }
 0x153   :  { %2468 = vset.pattern.permute.xlu1 %v2543_v18  ;;  %v365_v18 = vrot.slane %v357_v5, %v2671_v38 }
 0x154   :  { %1500 = vperm.xlu1 %2468, %v1117_v59  }
 0x155   :  { %v2276_v12 = vcombine.low %v353_v20, %v365_v18 }
 0x157   :  { %v386_v19 = vshrl.u32 %v2276_v12, 16  ;;  %v389_v22 = vshll.u32 %v2276_v12, 16 }
 0x158   :  { %1522 = vperm.xlu1 %2468, %v2876_v41  }
 0x159   :  { %v388_v27 = vrot.slane %v386_v19, 6  ;;  %v391_v29 = vrot.slane %v389_v22, 7 }
 0x15b   :  { %v392_v37 = vor.u32 %v391_v29, %v388_v27 }
 0x15c   :  { %1533 = vperm.xlu1 %2468, %v2892_v34  }
 0x15d   :  { %v784_v10 = vpop.permute.xlu0 %783  ;;  %v399_v58 = vmul.bf16 %v392_v37, %v2796_v44 }
 0x15e   :  { %v786_v17 = vpop.permute.xlu1 %785 }
 0x160   :  { %2471 = vset.pattern.permute.xlu1 %v2540_v6  ;;  %v378_v6 = vshrl.u32 %v2275_v26, 16 }
 0x161   :  { %1135 = vperm.xlu1 %2471, %v1118_v21  }
 0x162   :  { %v380_v24 = vrot.slane %v378_v6, 6 }
 0x164   :  { %v763_v7 = vpop.permute.xlu0 %762  ;;  %v765_v60 = vpop.permute.xlu1 %764  ;;  %v384_v36 = vor.u32 %v383_v25, %v380_v24 }
 0x165   :  { %1147 = vperm.xlu1 %2471, %v2876_v41  }
 0x166   :  { %v393_v46 = vsel %vm376_vm3, %v384_v36, %v392_v37  ;;  %v397_v47 = vmul.bf16 %v384_v36, %v2794_v42 }
 0x167   :  { %v398_v50 = vmul.bf16 %v393_v46, %v2798_v48 }
 0x168   :  { %v807_v14 = vpop.permute.xlu0 %806  ;;  %v809_v23 = vpop.permute.xlu1 %808 }
 0x169   :  { %2472 = vset.pattern.permute.xlu1 %v2554_v13 }
 0x16a   :  { %1640 = vperm.xlu1 %2472, %v1117_v59  }
 0x16e   :  { %v844_v31 = vpop.permute.xlu0 %843  ;;  %1662 = vperm.xlu1 %2472, %v2876_v41  }
 0x170   :  { %v846_v30 = vpop.permute.xlu1 %845 }
 0x172   :  { %v719_v35 = vpop.permute.xlu0 %718  ;;  %1673 = vperm.xlu1 %2472, %v2892_v34  }
 0x173   :  { %v869_v49 = vsel %vm866_vm6, %v397_v47, %v719_v35 }
 0x174   :  { %v721_v39 = vpop.permute.xlu1 %720 }
 0x175   :  { %v872_v52 = vsel %vm866_vm6, %v398_v50, %v721_v39 }
 0x176   :  { %v821_v40 = vpop.permute.xlu0 %820 }
 0x178   :  { %v823_v63 = vpop.permute.xlu1 %822 }
 0x17a   :  { %v748_v15 = vpop.permute.xlu0 %747 }
 0x17b   :  { %v877_v51 = vsel %vm100_vm0, %v869_v49, %v748_v15 }
 0x17c   :  { %v884_v55 = vsel %vm882_vm8, %v877_v51, %v763_v7  ;;  %v750_v57 = vpop.permute.xlu1 %749 }
 0x17d   :  { %v891_v56 = vsel %vm889_vm9, %v884_v55, %v784_v10  ;;  %v879_v42 = vsel %vm100_vm0, %v872_v52, %v750_v57 }
 0x17e   :  { %v886_v48 = vsel %vm882_vm8, %v879_v42, %v765_v60  ;;  %v723_v62 = vpop.permute.xlu0 %722  ;;  %v898_v9 = vsel %vm896_vm10, %v891_v56, %v807_v14 }
 0x17f   :  { %v893_v28 = vsel %vm889_vm9, %v886_v48, %v786_v17  ;;  %v875_v0 = vsel %vm866_vm6, %v399_v58, %v723_v62  ;;  %v905_v61 = vsel %vm903_vm11, %v898_v9, %v821_v40 }
 0x180   :  { %v752_v1 = vpop.permute.xlu1 %751  ;;  %v912_v2 = vsel %vm910_vm12, %v905_v61, %v844_v31  ;;  %v900_v32 = vsel %vm896_vm10, %v893_v28, %v809_v23 }
 0x181   :  { %v947_v54 = vshrl.u32 %v912_v2, 16  ;;  %v950_v43 = vshll.u32 %v912_v2, 16  ;;  %v907_v44 = vsel %vm903_vm11, %v900_v32, %v823_v63  ;;  %v881_v41 = vsel %vm100_vm0, %v875_v0, %v752_v1 }
 0x182   :  { %v767_v59 = vpop.permute.xlu0 %766  ;;  %v914_v21 = vsel %vm910_vm12, %v907_v44, %v846_v30 }
 0x183   :  { %v888_v34 = vsel %vm882_vm8, %v881_v41, %v767_v59  ;;  %v954_v3 = vshrl.u32 %v914_v21, 16  ;;  %v957_v13 = vshll.u32 %v914_v21, 16  ;;  %v949_v45 = vrot.slane %v947_v54, 1 }
 0x184   :  { %v788_v33 = vpop.permute.xlu1 %787  ;;  %v952_v4 = vrot.slane %v950_v43, 2 }
 0x185   :  { %v956_v5 = vrot.slane %v954_v3, 1  ;;  %v959_v10 = vrot.slane %v957_v13, 2  ;;  %v895_v17 = vsel %vm889_vm9, %v888_v34, %v788_v33 }
 0x186   :  { %v811_v11 = vpop.permute.xlu0 %810  ;;  %v953_v20 = vor.u32 %v952_v4, %v949_v45 }
 0x187   :  { %v902_v53 = vsel %vm896_vm10, %v895_v17, %v811_v11  ;;  %v960_v18 = vor.u32 %v959_v10, %v956_v5 }
 0x188   :  { %v825_v7 = vpop.permute.xlu1 %824 }
 0x189   :  { %v961_v60 = vsel %vm946_vm7, %v953_v20, %v960_v18  ;;  %v909_v26 = vsel %vm903_vm11, %v902_v53, %v825_v7 }
 0x18a   :  { %1094 = vmatmul.mubr.bf16.vlgmr.msra.gmra.mrb[16].mxu0 %v961_v60  ;;  %v848_v12 = vpop.permute.xlu0 %847 }
 0x18b   :  { %v916_v14 = vsel %vm910_vm12, %v909_v26, %v848_v12  ;;  %2296 = vmatprep.mubr.msk.bf16.mxu0 %vm100_vm0, %v2867_v8 }
 0x18c   :  { %v977_v6 = vshrl.u32 %v916_v14, 16  ;;  %v980_v16 = vshll.u32 %v916_v14, 16 }
 0x18e   :  { %v979_v19 = vrot.slane %v977_v6, 1  ;;  %v982_v22 = vrot.slane %v980_v16, 2 }
 0x190   :  { %v983_v23 = vor.u32 %v982_v22, %v979_v19 }
 0x192   :  { %v984_v31 = vsel %vm946_vm7, %v960_v18, %v983_v23 }
 0x193   :  { %1102 = vmatmul.mubr.bf16.gmra.mrb[20].mxu0 %v984_v31 }
 0x199   :  { %v1447_v24 = vpop.permute.xlu1 %1446 }
 0x19a   :  { %v1455_v0 = vrot.slane %v1447_v24, %v2671_v38 }
 0x19b   :  { %v1226_v46 = vpop.permute.xlu0 %1225 }
 0x19c   :  { %v1234_v3 = vrot.slane %v1226_v46, %v2671_v38 }
 0x19e   :  { %v1204_v25 = vpop.permute.xlu1 %1203 }
 0x19f   :  { %v1212_v1 = vrot.slane %v1204_v25, %v2671_v38 }
 0x1a0   :  { %v1458_v63 = vpop.permute.xlu0 %1457 }
 0x1a1   :  { %v1466_v61 = vrot.slane %v1458_v63, %v2671_v38 }
 0x1a2   :  { %v1215_v27 = vpop.permute.xlu1 %1214 }
 0x1a3   :  { %v1223_v2 = vrot.slane %v1215_v27, %v2671_v38  ;;  %v2971_v59 = vcombine.low %v1455_v0, %v1466_v61 }
 0x1a4   :  { %v1436_v50 = vpop.permute.xlu0 %1435 }
 0x1a5   :  { %v1444_v54 = vrot.slane %v1436_v50, %v2671_v38  ;;  %v2975_v34 = vcombine.low %v1212_v1, %v1223_v2  ;;  %v1486_v10 = vshrl.u32 %v2971_v59, 16  ;;  %v1489_v20 = vshll.u32 %v2971_v59, 16 }
 0x1a6   :  { %v1237_v29 = vpop.permute.xlu1 %1236 }
 0x1a7   :  { %v1245_v13 = vrot.slane %v1237_v29, %v2671_v38  ;;  %v1256_v17 = vrot.slane %v2975_v34, 6  ;;  %v2999_v27 = vrot.slane %v1486_v10, 7 }
 0x1a9   :  { %v1289_v51 = vpop.permute.xlu0 %1288  ;;  %v2985_v11 = vcombine.low %v1234_v3, %v1245_v13 }
 0x1aa   :  { %v1297_v5 = vrot.slane %v1289_v51, %v2671_v38 }
 0x1ab   :  { %v1425_v30 = vpop.permute.xlu1 %1424 }
 0x1ac   :  { %v1433_v32 = vrot.slane %v1425_v30, %v2671_v38 }
 0x1ae   :  { %v2955_v55 = vpop.permute.xlu0 %1588  ;;  %v2979_v45 = vcombine.low %v1433_v32, %v1444_v54 }
 0x1b0   :  { %v1267_v35 = vpop.permute.xlu1 %1266  ;;  %v1479_v53 = vshrl.u32 %v2979_v45, 16 }
 0x1b1   :  { %v1275_v43 = vrot.slane %v1267_v35, %v2671_v38 }
 0x1b2   :  { %v3006_v63 = vrot.slane %v1479_v53, 7 }
 0x1b3   :  { %v1345_v56 = vpop.permute.xlu0 %1344 }
 0x1b4   :  { %v1278_v36 = vpop.permute.xlu1 %1277  ;;  %v1353_v26 = vrot.slane %v1345_v56, %v2671_v38 }
 0x1b5   :  { %v1286_v44 = vrot.slane %v1278_v36, %v2671_v38  ;;  %v1257_v36 = vrot.slane %v2985_v11, 6  ;;  %v2504_v11 = vld [vmem:[%s3273_s4 + $0x60] sm:$0xff]  }
 0x1b7   :  { %v1378_v58 = vpop.permute.xlu0 %1377  ;;  %v2301_v33 = vcombine.low %v1275_v43, %v1286_v44 }
 0x1b8   :  { %v1300_v37 = vpop.permute.xlu1 %1299  ;;  %v1386_v12 = vrot.slane %v1378_v58, %v2671_v38 }
 0x1b9   :  { %v1308_v4 = vrot.slane %v1300_v37, %v2671_v38  ;;  %v1321_v6 = vshrl.u32 %v2301_v33, 16  ;;  %v1324_v29 = vshll.u32 %v2301_v33, 16  ;;  %v1597_v37 = vrot.slane %v2955_v55, %v2671_v38 }
 0x1bb   :  { %v2302_v16 = vcombine.low %v1297_v5, %v1308_v4  ;;  %v1323_v51 = vrot.slane %v1321_v6, 5  ;;  %v1326_v58 = vrot.slane %v1324_v29, 6 }
 0x1bc   :  { %v1512_v62 = vpop.permute.xlu0 %1511 }
 0x1bd   :  { %v2949_v39 = vpop.permute.xlu1 %1577  ;;  %v1520_v22 = vrot.slane %v1512_v62, %v2671_v38  ;;  %v1329_v50 = vshrl.u32 %v2302_v16, 16  ;;  %v1327_v29 = vor.u32 %v1326_v58, %v1323_v51 }
 0x1be   :  { %v1586_v62 = vrot.slane %v2949_v39, %v2671_v38 }
 0x1bf   :  { %v1331_v32 = vrot.slane %v1329_v50, 5 }
 0x1c0   :  { %v3015_v39 = vcombine.low %v1586_v62, %v1597_v37 }
 0x1c1   :  { %v2951_v40 = vpop.permute.xlu1 %1599  ;;  %v2961_v28 = vpop.permute.xlu0 %1123 }
 0x1c5   :  { %v2953_v8 = vpop.permute.xlu1 %1610  ;;  %v2973_v21 = vpop.permute.xlu0 %1159 }
 0x1c6   :  { %v1619_v0 = vrot.slane %v2953_v8, %v2671_v38 }
 0x1ca   :  { %v1356_v47 = vpop.permute.xlu1 %1355  ;;  %v1652_v14 = vpop.permute.xlu0 %1651 }
 0x1cb   :  { %v1364_v7 = vrot.slane %v1356_v47, %v2671_v38  ;;  %v1660_v35 = vrot.slane %v1652_v14, %v2671_v38 }
 0x1cd   :  { %v2303_v46 = vcombine.low %v1353_v26, %v1364_v7 }
 0x1ce   :  { %v1367_v49 = vpop.permute.xlu1 %1366 }
 0x1cf   :  { %v1375_v60 = vrot.slane %v1367_v49, %v2671_v38  ;;  %v1482_v49 = vshll.u32 %v2979_v45, 16  ;;  %v1398_v61 = vshrl.u32 %v2303_v46, 16  ;;  %v1401_v1 = vshll.u32 %v2303_v46, 16 }
 0x1d1   :  { %v2304_v47 = vcombine.low %v1375_v60, %v1386_v12  ;;  %v1400_v8 = vrot.slane %v1398_v61, 4  ;;  %v1403_v5 = vrot.slane %v1401_v1, 5  ;;  %v1491_v60 = vor.u32 %v1489_v20, %v2999_v27  ;;  %v2499_v61 = vld [vmem:[%s3273_s4 + $0x8] sm:$0xff]  }
 0x1d2   :  { %v1630_v20 = vrot.slane %v3015_v39, 6  ;;  %v1484_v37 = vor.u32 %v1482_v49, %v3006_v63  ;;  %v1258_v1 = vsel %vm457_vm1, %v1256_v17, %v1257_v36 }
 0x1d3   :  { %v1501_v15 = vpop.permute.xlu1 %1500  ;;  %v1406_v2 = vshrl.u32 %v2304_v47, 16  ;;  %v1409_v54 = vshll.u32 %v2304_v47, 16  ;;  %v2555_v47 = vmov 0.0  }
 0x1d4   :  { %v1509_v19 = vrot.slane %v1501_v15, %v2671_v38 }
 0x1d5   :  { %v1408_v10 = vrot.slane %v1406_v2, 4  ;;  %v1411_v53 = vrot.slane %v1409_v54, 5  ;;  %v1492_v2 = vsel %vm1477_vm13, %v3006_v63, %v1491_v60 }
 0x1d6   :  { %v2307_v15 = vcombine.low %v1509_v19, %v1520_v22  ;;  %v2497_v19 = vld [vmem:[%s3273_s4] sm:$0xff]  }
 0x1d7   :  { %v1523_v52 = vpop.permute.xlu1 %1522  ;;  %v3033_v62 = vor.u32 %v1411_v53, %v1408_v10  ;;  %v2501_v53 = vld [vmem:[%s3273_s4 + $0x10] sm:$0xff]  }
 0x1d8   :  { %v1531_v23 = vrot.slane %v1523_v52, %v2671_v38  ;;  %v1332_v52 = vshll.u32 %v2302_v16, 16  ;;  %v1554_v43 = vshrl.u32 %v2307_v15, 16  ;;  %v1557_v44 = vshll.u32 %v2307_v15, 16  ;;  %v2496_v16 = vld [vmem:[%s3273_s4 + $0x40] sm:$0xff]  }
 0x1d9   :  { %2348 = vmatprep.subr.bf16.mxu1 %v2496_v16 }
 0x1da   :  { %v1559_v7 = vrot.slane %v1557_v44, 7  ;;  %2349 = vmatpush3.bf16.msra.mxu1 %v2497_v19 }
 0x1db   :  { %v1534_v57 = vpop.permute.xlu1 %1533 }
 0x1dc   :  { %v1542_v31 = vrot.slane %v1534_v57, %v2671_v38 }
 0x1de   :  { %v2308_v57 = vcombine.low %v1531_v23, %v1542_v31 }
 0x1e0   :  { %v2957_v42 = vpop.permute.xlu1 %1135  ;;  %v1562_v59 = vshrl.u32 %v2308_v57, 16  ;;  %v1565_v45 = vshll.u32 %v2308_v57, 16 }
 0x1e2   :  { %v1564_v26 = vrot.slane %v1562_v59, 6  ;;  %v1567_v22 = vrot.slane %v1565_v45, 7 }
 0x1e4   :  { %v2959_v48 = vpop.permute.xlu1 %1147  ;;  %v3035_v58 = vor.u32 %v1567_v22, %v1564_v26 }
 0x1e9   :  { %v1641_v9 = vpop.permute.xlu1 %1640 }
 0x1ea   :  { %v1649_v30 = vrot.slane %v1641_v9, %v2671_v38  ;;  %v1608_v9 = vrot.slane %v2951_v40, %v2671_v38 }
 0x1ec   :  { %v2311_v55 = vcombine.low %v1649_v30, %v1660_v35  ;;  %v3017_v4 = vcombine.low %v1608_v9, %v1619_v0  ;;  %v2498_v0 = vld [vmem:[%s3273_s4 + $0x48] sm:$0xff]  }
 0x1ed   :  { %v1663_v41 = vpop.permute.xlu1 %1662  ;;  %2350 = vmatprep.subr.bf16.mxu1 %v2498_v0 }
 0x1ee   :  { %v1671_v24 = vrot.slane %v1663_v41, %v2671_v38  ;;  %v1334_v41 = vrot.slane %v1332_v52, 6  ;;  %v1694_v40 = vshrl.u32 %v2311_v55, 16  ;;  %v1697_v33 = vshll.u32 %v2311_v55, 16  ;;  %2351 = vmatpush3.bf16.msra.mxu1 %v2499_v61 }
 0x1ef   :  { %v1631_v46 = vrot.slane %v3017_v4, 6  ;;  %v2506_v4 = vld [vmem:[%s3273_s4 + $0x68] sm:$0xff]  }
 0x1f0   :  { %v1696_v23 = vrot.slane %v1694_v40, 5  ;;  %v1699_v31 = vrot.slane %v1697_v33, 6  ;;  %v3026_v30 = vor.u32 %v1334_v41, %v1331_v32  ;;  %v1498_v32 = vmul.bf16 0.0|0.0, %v2999_v27  ;;  %v2500_v33 = vld [vmem:[%s3273_s4 + $0x50] sm:$0xff]  }
 0x1f1   :  { %v1674_v18 = vpop.permute.xlu1 %1673  ;;  %v3057_v54 = vsel %vm457_vm1, %v1630_v20, %v1631_v46  ;;  %vm1794_vm1 = vcmask 1040384   ;;  %2352 = vmatprep.subr.bf16.mxu1 %v2500_v33 }
 0x1f2   :  { %v1682_v25 = vrot.slane %v1674_v18, %v2671_v38  ;;  %v1556_v18 = vrot.slane %v1554_v43, 6  ;;  %v1700_v9 = vor.u32 %v1699_v31, %v1696_v23  ;;  %v1336_v41 = vsel %vm1319_vm14, %v1327_v29, %v3026_v30  ;;  %2353 = vmatpush3.bf16.msra.mxu1 %v2501_v53 }
 0x1f4   :  { %v2312_v56 = vcombine.low %v1671_v24, %v1682_v25  ;;  %v1560_v57 = vor.u32 %v1559_v7, %v1556_v18 }
 0x1f6   :  { %v1702_v3 = vshrl.u32 %v2312_v56, 16  ;;  %v1705_v13 = vshll.u32 %v2312_v56, 16  ;;  %v1404_v56 = vor.u32 %v1403_v5, %v1400_v8 }
 0x1f8   :  { %v1704_v14 = vrot.slane %v1702_v3, 5  ;;  %v1707_v6 = vrot.slane %v1705_v13, 6  ;;  %v1569_v13 = vsel %vm376_vm3, %v1560_v57, %v3035_v58 }
 0x1fa   :  { %v1708_v51 = vor.u32 %v1707_v6, %v1704_v14 }
 0x1fc   :  { %v1715_v59 = vmul.bf16 0.0|0.0, %v1708_v51  ;;  %v1709_v10 = vsel %vm1319_vm14, %v1700_v9, %v1708_v51 }
 0x1fe   :  { %v3077_v14 = vrot.slane %v1715_v59, 1 }
 0x25d   :  { %v1095_v12 = vpop.f32.mrb[16].mxu0 }
 0x25e   :  { %v1110_v24 = vmax.f32 %v1095_v12, 0.0  ;;  %v1097_v25 = vpop.f32.mrb[17].mxu0 }
 0x25f   :  { %v1098_v35 = vpop.f32.mrb[18].mxu0 }
 0x260   :  { %v3031_v50 = vpack.c.bf16 %v1110_v24, %v2555_v47  ;;  %v1111_v15 = vmax.f32 %v1098_v35, 0.0  ;;  %v1100_v52 = vpop.f32.mrb[19].mxu0 }
 0x262   :  { %v1420_v55 = vpack.c.bf16 %v1111_v15, %v1110_v24  ;;  %v1262_v49 = vmul.bf16 %v1256_v17, %v3031_v50  ;;  %v1340_v34 = vmul.bf16 %v1327_v29, %v3031_v50  ;;  %v1413_v17 = vsel %vm587_vm2, %v1404_v56, %v3033_v62 }
 0x263   :  { %v1417_v45 = vmul.bf16 %v1404_v56, %v3031_v50 }
 0x264   :  { %v1573_v43 = vmul.bf16 %v1560_v57, %v1420_v55  ;;  %v1496_v44 = vmul.bf16 %v1484_v37, %v1420_v55  ;;  %v1719_v63 = vshll.u32 %v1262_v49, 16  ;;  %v1713_v39 = vmul.bf16 %v1700_v9, %v1420_v55 }
 0x265   :  { %v3068_v40 = vmul.bf16 %v1630_v20, %v1420_v55  ;;  %v1775_v26 = vshrl.u32 %v1420_v55, 16  ;;  %v1778_v12 = vshll.u32 %v1420_v55, 16  ;;  %v1749_v22 = vrot.slane %v1340_v34, 1 }
 0x266   :  { %1809 = vrot.lane.b32.xlu0 %v1573_v43, %s2545_s13  ;;  %v1103_v3 = vpop.f32.mrb[20].mxu0  ;;  %v1795_v7 = vrot.slane %v1496_v44, 7  ;;  %v1721_v60 = vrot.slane %v1719_v63, 1  ;;  %v1847_v23 = vrot.slane %v1713_v39, 1  ;;  %v1763_v31 = vrot.slane %v1417_v45, 2  ;;  %v2503_v63 = vld [vmem:[%s3273_s4 + $0x18] sm:$0xff]  }
 0x267   :  { %v1112_v8 = vmax.f32 %v1103_v3, 0.0  ;;  %v1105_v5 = vpop.f32.mrb[21].mxu0  ;;  %v1717_v24 = vshrl.u32 %v1262_v49, 16  ;;  %v1818_v25 = vshll.u32 %v3068_v40, 16  ;;  %v1777_v52 = vrot.slane %v1775_v26, 6 }
 0x268   :  { %v1106_v18 = vpop.f32.mrb[22].mxu0  ;;  %v1780_v57 = vrot.slane %v1778_v12, 7 }
 0x269   :  { %v3079_v6 = vpack.c.bf16 %v1112_v8, %v1111_v15  ;;  %v1113_v16 = vmax.f32 %v1106_v18, 0.0  ;;  %v1108_v19 = vpop.f32.mrb[23].mxu0  ;;  %v1722_v15 = vor.u32 %v1721_v60, %v1717_v24  ;;  %v1820_v18 = vrot.slane %v1818_v25, 1  ;;  %v2505_v60 = vld [vmem:[%s3273_s4 + $0x20] sm:$0xff]  }
 0x26a   :  { %1800 = vrot.lane.b32.xlu0 %v1795_v7, %s2551_s29  ;;  %v3116_v39 = vor.u32 %v1780_v57, %v1777_v52 }
 0x26b   :  { %v3083_v29 = vpack.c.bf16 %v1113_v16, %v1113_v16  ;;  %v1421_v20 = vpack.c.bf16 %v1113_v16, %v1112_v8  ;;  %v1341_v35 = vmul.bf16 %v1336_v41, %v3079_v6  ;;  %v1418_v37 = vmul.bf16 %v1413_v17, %v3079_v6 }
 0x26c   :  { %v1263_v47 = vmul.bf16 %v1258_v1, %v3079_v6 }
 0x26d   :  { %v1574_v56 = vmul.bf16 %v1569_v13, %v1421_v20  ;;  %v1750_v51 = vrot.slane %v1341_v35, 1  ;;  %v1714_v9 = vmul.bf16 %v1709_v10, %v1421_v20  ;;  %v1497_v55 = vmul.bf16 %v1492_v2, %v1421_v20 }
 0x26e   :  { %v1764_v0 = vrot.slane %v1418_v37, 2  ;;  %v1342_v49 = vmul.bf16 %v3026_v30, %v3083_v29  ;;  %v1724_v61 = vshll.u32 %v1263_v47, 16  ;;  %v1419_v43 = vmul.bf16 %v3033_v62, %v3083_v29  ;;  %v2502_v62 = vld [vmem:[%s3273_s4 + $0x58] sm:$0xff]  }
 0x26f   :  { %1811 = vrot.lane.b32.xlu1 %v1574_v56, %s2545_s13  ;;  %v1751_v44 = vsel %vm1748_vm15, %v1749_v22, %v1750_v51  ;;  %v1848_v1 = vrot.slane %v1714_v9, 1  ;;  %v1796_v41 = vrot.slane %v1497_v55, 7  ;;  %v3097_v59 = vmul.bf16 %v1257_v36, %v3083_v29  ;;  %2354 = vmatprep.subr.bf16.mxu1 %v2502_v62 }
 0x270   :  { %1754 = vrot.lane.b32.xlu0 %v1751_v44, %s2545_s13  ;;  %v1765_v2 = vsel %vm756_vm4, %v1763_v31, %v1764_v0  ;;  %v3101_v30 = vrot.slane %v1342_v49, 1  ;;  %v1726_v34 = vrot.slane %v1724_v61, 1  ;;  %v3103_v17 = vrot.slane %v1419_v43, 2  ;;  %2355 = vmatpush3.bf16.msra.mxu1 %v2503_v63  ;;  %v2508_v49 = vld [vmem:[%s3273_s4 + $0x70] sm:$0xff]  }
 0x271   :  { %v1849_v36 = vsel %vm1748_vm15, %v1847_v23, %v1848_v1  ;;  %v1797_v3 = vsel %vm1794_vm1, %v1795_v7, %v1796_v41  ;;  %v1728_v13 = vshrl.u32 %v1263_v47, 16  ;;  %v1732_v5 = vshll.u32 %v3097_v59, 16  ;;  %2356 = vmatprep.subr.bf16.mxu1 %v2504_v11  ;;  %v2509_v61 = vld [vmem:[%s3273_s4 + $0x30] sm:$0xff]  }
 0x272   :  { %v1753_v45 = vsel %vm1748_vm15, %v1750_v51, %v3101_v30  ;;  %v1727_v33 = vsel %vm694_vm5, %v1722_v15, %v1726_v34  ;;  %v1767_v8 = vsel %vm756_vm4, %v1764_v0, %v3103_v17  ;;  %v1637_v53 = vmul.bf16 %v3057_v54, %v1421_v20 }
 0x273   :  { %1802 = vrot.lane.b32.xlu1 %v1797_v3, %s2551_s29  ;;  %v1730_v10 = vor.u32 %v1728_v13, %v1726_v34  ;;  %v1895_v7 = vsel %vm100_vm0, %v1849_v36, %v3116_v39  ;;  %v3132_v26 = vrot.slane %v1732_v5, 1  ;;  %v1783_v12 = vshrl.u32 %v1421_v20, 16  ;;  %v2510_v3 = vld [vmem:[%s3273_s4 + $0x78] sm:$0xff]  }
 0x274   :  { %1768 = vrot.lane.b32.xlu0 %v1765_v2, %s2550_s0  ;;  %v1786_v16 = vshll.u32 %v1421_v20, 16  ;;  %v1851_v19 = vsel %vm1748_vm15, %v1848_v1, %v3077_v14  ;;  %v1816_v54 = vshrl.u32 %v3068_v40, 16  ;;  %v1823_v22 = vshll.u32 %v1637_v53, 16  ;;  %2357 = vmatpush3.bf16.msra.mxu1 %v2505_v60  ;;  %v2511_v13 = vld [vmem:[%s3273_s4 + $0x38] sm:$0xff]  }
 0x275   :  { %v3139_v23 = vmul.bf16 0.0|0.0, %v1631_v46  ;;  %v1735_v31 = vsel %vm694_vm5, %v1730_v10, %v3132_v26  ;;  %v1785_v24 = vrot.slane %v1783_v12, 6  ;;  %v1798_v40 = vrot.slane %v1498_v32, 7  ;;  %v2507_v46 = vld [vmem:[%s3273_s4 + $0x28] sm:$0xff]   ;;  %2358 = vmatprep.subr.bf16.mxu1 %v2506_v4 }
 0x276   :  { %v1788_v25 = vrot.slane %v1786_v16, 7  ;;  %v1821_v35 = vor.u32 %v1820_v18, %v1816_v54  ;;  %v1825_v20 = vrot.slane %v1823_v22, 1  ;;  %v1968_v47 = vshrl.u32 %v1895_v7, 16 }
 0x277   :  { %1756 = vrot.lane.b32.xlu1 %v1753_v45, %s2545_s13  ;;  %v1971_v15 = vshll.u32 %v1895_v7, 16  ;;  %v1799_v57 = vsel %vm1794_vm1, %v1796_v41, %v1798_v40  ;;  %v1831_v56 = vshll.u32 %v3139_v23, 16  ;;  %v1827_v51 = vshrl.u32 %v1637_v53, 16  ;;  %v3187_v45 = vld [vmem:[%s3273_s4 + $0x80] sm:$0xff]  }
 0x278   :  { %1739 = vrot.lane.b32.xlu0 %v1727_v33, %s2551_s29  ;;  %v3147_v37 = vor.u32 %v1788_v25, %v1785_v24  ;;  %v1826_v52 = vsel %vm694_vm5, %v1821_v35, %v1825_v20  ;;  %2359 = vmatpush3.bf16.msra.mxu1 %v2507_v46  ;;  %v1970_v44 = vrot.slane %v1968_v47, 1  ;;  %v1835_v5 = vshrl.u32 %v3139_v23, 16 }
 0x279   :  { %v1973_v1 = vrot.slane %v1971_v15, 2  ;;  %2360 = vmatprep.subr.bf16.mxu1 %v2508_v49  ;;  %v1829_v34 = vor.u32 %v1827_v51, %v1825_v20  ;;  %v1833_v36 = vrot.slane %v1831_v56, 1  ;;  %v1575_v53 = vmul.bf16 0.0|0.0, %v3035_v58 }
 0x27a   :  { %v3161_v27 = vsel %vm376_vm3, %v3116_v39, %v3147_v37  ;;  %v1899_v32 = vsel %vm100_vm0, %v3077_v14, %v3147_v37  ;;  %v1736_v60 = vshrl.u32 %v3097_v59, 16  ;;  %v1144_v58 = vrot.slane %v2957_v42, %v2671_v38 }
 0x27b   :  { %1770 = vrot.lane.b32.xlu1 %v1767_v8, %s2550_s0  ;;  %v1897_v9 = vsel %vm100_vm0, %v1851_v19, %v3161_v27  ;;  %v1999_v55 = vshrl.u32 %v1899_v32, 16  ;;  %v2002_v0 = vshll.u32 %v1899_v32, 16  ;;  %v1974_v33 = vor.u32 %v1973_v1, %v1970_v44 }
 0x27c   :  { %1804 = vrot.lane.b32.xlu0 %v1799_v57, %s2551_s29  ;;  %v1975_v14 = vshrl.u32 %v1897_v9, 16  ;;  %v1978_v43 = vshll.u32 %v1897_v9, 16  ;;  %2361 = vmatpush3.bf16.msra.mxu1 %v2509_v61  ;;  %v1834_v10 = vsel %vm694_vm5, %v1829_v34, %v1833_v36  ;;  %v1738_v12 = vor.u32 %v1736_v60, %v3132_v26 }
 0x27d   :  { %v2001_v41 = vrot.slane %v1999_v55, 1  ;;  %v2004_v2 = vrot.slane %v2002_v0, 2  ;;  %2362 = vmatprep.subr.bf16.mxu1 %v2510_v3  ;;  %v1837_v16 = vor.u32 %v1835_v5, %v1833_v36  ;;  %v1132_v59 = vrot.slane %v2961_v28, %v2671_v38 }
 0x27e   :  { %v1977_v62 = vrot.slane %v1975_v14, 1  ;;  %v1980_v63 = vrot.slane %v1978_v43, 2  ;;  %v1156_v26 = vrot.slane %v2959_v48, %v2671_v38  ;;  %v1168_v22 = vrot.slane %v2973_v21, %v2671_v38 }
 0x27f   :  { %1741 = vrot.lane.b32.xlu1 %v1735_v31, %s2551_s29  ;;  %v2005_v11 = vor.u32 %v2004_v2, %v2001_v41  ;;  %v2297_v54 = vcombine.low %v1132_v59, %v1144_v58 }
 0x280   :  { %1838 = vrot.lane.b32.xlu0 %v1826_v52, %s2550_s0  ;;  %v1981_v8 = vor.u32 %v1980_v63, %v1977_v62  ;;  %2363 = vmatpush3.bf16.msra.mxu1 %v2511_v13 }
 0x281   :  { %2409 = vmatprep.subr.bf16.mxu1 %v3187_v45  ;;  %v1180_v23 = vshrl.u32 %v2297_v54, 16  ;;  %v1183_v31 = vshll.u32 %v2297_v54, 16 }
 0x282   :  { %v3193_v18 = vsel %vm946_vm7, %v1974_v33, %v1981_v8  ;;  %v3196_v7 = vsel %vm946_vm7, %v1981_v8, %v2005_v11 }
 0x283   :  { %1840 = vrot.lane.b32.xlu1 %v1834_v10, %s2550_s0  ;;  %v1182_v25 = vrot.slane %v1180_v23, 6 }
 0x284   :  { %1813 = vrot.lane.b32.xlu0 %v1575_v53, %s2545_s13 }
 0x287   :  { %1743 = vrot.lane.b32.xlu1 %v1738_v12, %s2551_s29 }
 0x288   :  { %1842 = vrot.lane.b32.xlu0 %v1837_v16, %s2550_s0 }
 0x28b   :  { %1758 = vrot.lane.b32.xlu1 %v3101_v30, %s2545_s13  ;;  %v2298_v30 = vcombine.low %v1156_v26, %v1168_v22 }
 0x28d   :  { %v1188_v35 = vshrl.u32 %v2298_v30, 16  ;;  %v1191_v20 = vshll.u32 %v2298_v30, 16 }
 0x28f   :  { %1772 = vrot.lane.b32.xlu1 %v3103_v17, %s2550_s0  ;;  %v1185_v17 = vrot.slane %v1183_v31, 7  ;;  %v1190_v28 = vrot.slane %v1188_v35, 6  ;;  %v1193_v46 = vrot.slane %v1191_v20, 7 }
 0x291   :  { %v1186_v4 = vor.u32 %v1185_v17, %v1182_v25  ;;  %v1194_v52 = vor.u32 %v1193_v46, %v1190_v28 }
 0x293   :  { %v1199_v57 = vmul.bf16 %v1186_v4, %v3031_v50  ;;  %v1195_v51 = vsel %vm376_vm3, %v1186_v4, %v1194_v52  ;;  %v1201_v4 = vmul.bf16 %v1194_v52, %v3083_v29 }
 0x294   :  { %v1200_v49 = vmul.bf16 %v1195_v51, %v3079_v6 }
 0x2d8   :  { %v1810_v19 = vpop.permute.xlu0 %1809 }
 0x2dc   :  { %v1801_v24 = vpop.permute.xlu0 %1800 }
 0x2dd   :  { %v1875_v0 = vsel %vm100_vm0, %v3116_v39, %v1801_v24 }
 0x2de   :  { %v1883_v1 = vsel %vm889_vm9, %v1875_v0, %v1810_v19 }
 0x2e1   :  { %v1812_v42 = vpop.permute.xlu1 %1811 }
 0x2e2   :  { %v1755_v40 = vpop.permute.xlu0 %1754 }
 0x2e5   :  { %v1803_v47 = vpop.permute.xlu1 %1802 }
 0x2e6   :  { %v1769_v15 = vpop.permute.xlu0 %1768  ;;  %v1878_v61 = vsel %vm100_vm0, %v3161_v27, %v1803_v47 }
 0x2e7   :  { %v1885_v6 = vsel %vm889_vm9, %v1878_v61, %v1812_v42 }
 0x2e9   :  { %v1757_v48 = vpop.permute.xlu1 %1756 }
 0x2ea   :  { %v1740_v38 = vpop.permute.xlu0 %1739 }
 0x2eb   :  { %v1854_v21 = vsel %vm100_vm0, %v1199_v57, %v1740_v38  ;;  %v2514_v38 = vld [vmem:[%s3273_s4 + $0x90] sm:$0xff]  }
 0x2ec   :  { %v1862_v56 = vsel %vm889_vm9, %v1854_v21, %v1755_v40 }
 0x2ed   :  { %v1771_v32 = vpop.permute.xlu1 %1770  ;;  %v1868_v9 = vsel %vm903_vm11, %v1862_v56, %v1769_v15 }
 0x2ee   :  { %v1805_v55 = vpop.permute.xlu0 %1804  ;;  %v1938_v50 = vshrl.u32 %v1868_v9, 16  ;;  %v1941_v14 = vshll.u32 %v1868_v9, 16 }
 0x2ef   :  { %v1881_v58 = vsel %vm100_vm0, %v3147_v37, %v1805_v55  ;;  %v2513_v37 = vld [vmem:[%s3273_s4 + $0x88] sm:$0xff]   ;;  %s2556_s4 = smov [#allocation2]  }
 0x2f0   :  { %v1940_v11 = vrot.slane %v1938_v50, 1  ;;  %v1943_v27 = vrot.slane %v1941_v14, 2  ;;  %s2242_s21 = sshll.u32 %s2556_s4, 4  ;;  %s2243_s21 = int_to_ptr.vmem [resolvable:$true] %s2242_s21 }
 0x2f1   :  { %v1742_v43 = vpop.permute.xlu1 %1741  ;;  %s2515_s22 = scalar_lea.vmem %s2243_s21, 512  ;;  %p2520_p1 = scmp.lt.s32.totalorder %s2243_s21, %s2243_s21 }
 0x2f2   :  { %v1857_v44 = vsel %vm100_vm0, %v1200_v49, %v1742_v43  ;;  %v1839_v41 = vpop.permute.xlu0 %1838  ;;  %v1944_v26 = vor.u32 %v1943_v27, %v1940_v11  ;;  %p2516_p0 = scmp.ne.s32.totalorder %s2243_s21, %s2515_s22  ;;  %p2521_p2 = scmp.lt.s32.totalorder %s2515_s22, %s2515_s22 }
 0x2f3   :  { %v1864_v2 = vsel %vm889_vm9, %v1857_v44, %v1757_v48  ;;  %v1889_v34 = vsel %vm903_vm11, %v1883_v1, %v1839_v41 }
 0x2f4   :  { %v1870_v62 = vsel %vm903_vm11, %v1864_v2, %v1771_v32  ;;  %v1953_v39 = vshrl.u32 %v1889_v34, 16  ;;  %v1956_v63 = vshll.u32 %v1889_v34, 16  ;;  %p2522_p3 = por %p2521_p2, %p2520_p1 }
 0x2f5   :  { %v1945_v36 = vshrl.u32 %v1870_v62, 16  ;;  %v1948_v3 = vshll.u32 %v1870_v62, 16  ;;  %v1841_v13 = vpop.permute.xlu1 %1840 }
 0x2f6   :  { %v1955_v33 = vrot.slane %v1953_v39, 1  ;;  %v1958_v8 = vrot.slane %v1956_v63, 2  ;;  %v1891_v5 = vsel %vm903_vm11, %v1885_v6, %v1841_v13  ;;  %v1814_v10 = vpop.permute.xlu0 %1813  ;;  %p2523_p4 = pnand %p2522_p3, %p2516_p0 }
 0x2f7   :  { %v1947_v53 = vrot.slane %v1945_v36, 1  ;;  %v1950_v60 = vrot.slane %v1948_v3, 2  ;;  %v1960_v12 = vshrl.u32 %v1891_v5, 16  ;;  %v1963_v16 = vshll.u32 %v1891_v5, 16 }
 0x2f8   :  { %v1887_v23 = vsel %vm889_vm9, %v1881_v58, %v1814_v10  ;;  %v1959_v30 = vor.u32 %v1958_v8, %v1955_v33 }
 0x2f9   :  { %v1962_v59 = vrot.slane %v1960_v12, 1  ;;  %v1965_v19 = vrot.slane %v1963_v16, 2  ;;  %v1744_v54 = vpop.permute.xlu1 %1743  ;;  %v1951_v22 = vor.u32 %v1950_v60, %v1947_v53 }
 0x2fa   :  { %v1843_v31 = vpop.permute.xlu0 %1842  ;;  %v1860_v47 = vsel %vm100_vm0, %v1201_v4, %v1744_v54 }
 0x2fb   :  { %v1966_v24 = vor.u32 %v1965_v19, %v1962_v59  ;;  %v1893_v25 = vsel %vm903_vm11, %v1887_v23, %v1843_v31  ;;  %v1952_v17 = vsel %vm946_vm7, %v1944_v26, %v1951_v22 }
 0x2fc   :  { %v1991_v35 = vshrl.u32 %v1893_v25, 16  ;;  %v1994_v20 = vshll.u32 %v1893_v25, 16 }
 0x2fd   :  { %v1759_v42 = vpop.permute.xlu1 %1758  ;;  %v1967_v40 = vsel %vm946_vm7, %v1959_v30, %v1966_v24 }
 0x2fe   :  { %v1993_v28 = vrot.slane %v1991_v35, 1  ;;  %v1996_v46 = vrot.slane %v1994_v20, 2  ;;  %2163 = vmatprep.mubr.bf16.mxu1 %v1967_v40  ;;  %v1866_v48 = vsel %vm889_vm9, %v1860_v47, %v1759_v42 }
 0x2ff   :  { %2164 = vmatmul.mubr.bf16.vlgmr.msra.gmra.mrb[4].mxu1 %v1952_v17 }
 0x300   :  { %v1997_v15 = vor.u32 %v1996_v46, %v1993_v28  ;;  %2410 = vmatpush3.bf16.msra.mxu1 %v3187_v45 }
 0x301   :  { %v1773_v57 = vpop.permute.xlu1 %1772  ;;  %2411 = vmatprep.subr.bf16.mxu1 %v2513_v37 }
 0x302   :  { %v1872_v21 = vsel %vm903_vm11, %v1866_v48, %v1773_v57  ;;  %v1998_v29 = vsel %vm946_vm7, %v1966_v24, %v1997_v15 }
 0x303   :  { %v1983_v52 = vshrl.u32 %v1872_v21, 16  ;;  %v1986_v56 = vshll.u32 %v1872_v21, 16  ;;  %2171 = vmatprep.mubr.bf16.mxu1 %v1998_v29 }
 0x304   :  { %2412 = vmatpush3.bf16.msra.mxu1 %v2513_v37 }
 0x305   :  { %v1985_v32 = vrot.slane %v1983_v52, 1  ;;  %v1988_v51 = vrot.slane %v1986_v56, 2  ;;  %2413 = vmatprep.subr.bf16.mxu1 %v2514_v38 }
 0x307   :  { %v1989_v45 = vor.u32 %v1988_v51, %v1985_v32 }
 0x308   :  { %2414 = vmatpush3.bf16.msra.mxu1 %v2514_v38 }
 0x309   :  { %v1990_v9 = vsel %vm946_vm7, %v1951_v22, %v1989_v45 }
 0x30a   :  { %2172 = vmatmul.mubr.bf16.gmra.mrb[8].mxu1 %v1990_v9 }
 0x30b   :  { %2415 = vmatprep.mubr.msk.bf16.mxu1 %vm882_vm8, %v3193_v18 }
 0x312   :  { %2416 = vmatmul.mubr.msk.bf16.vlgmr.msra.gmra.mrb[0].mxu1 %vm882_vm8, %v3196_v7 }
 0x3d2   :  { %v2364_v55 = vpop.f32.mrb[4].mxu1 }
 0x3d3   :  { %v2365_v0 = vpop.f32.mrb[5].mxu1 }
 0x3d4   :  { %v2366_v49 = vadd.f32 %v2365_v0, %v2364_v55  ;;  %v2367_v61 = vpop.f32.mrb[6].mxu1 }
 0x3d5   :  { %v2368_v50 = vpop.f32.mrb[7].mxu1 }
 0x3d6   :  { %v2369_v14 = vadd.f32 %v2368_v50, %v2367_v61 }
 0x3dd   :  { %v2370_v43 = vpop.f32.mrb[8].mxu1 }
 0x3de   :  { %v2371_v44 = vpop.f32.mrb[9].mxu1 }
 0x3df   :  { %v2372_v1 = vadd.f32 %v2371_v44, %v2370_v43  ;;  %v2373_v41 = vpop.f32.mrb[10].mxu1 }
 0x3e0   :  { %v2374_v2 = vpop.f32.mrb[11].mxu1 }
 0x3e1   :  { %v2375_v34 = vadd.f32 %v2374_v2, %v2373_v41 }
 0x3e5   :  { %v2417_v62 = vpop.f32.mrb[0].mxu1 }
 0x3e6   :  { %v2419_v39 = vadd.f32 %v2417_v62, %v2372_v1  ;;  %v2214_v63 = vpop.f32.mrb[1].mxu1 }
 0x3e7   :  { %v2420_v6 = vadd.f32 %v2366_v49, %v2214_v63  ;;  %v2418_v18 = vpop.f32.mrb[2].mxu1 }
 0x3e8   :  { %v2231_v11 = vmax.f32 %v2419_v39, 0.0  ;;  %v2421_v27 = vadd.f32 %v2418_v18, %v2375_v34  ;;  %v2217_v7 = vpop.f32.mrb[3].mxu1 }
 0x3e9   :  { %v2229_v36 = vmax.f32 %v2420_v6, 0.0  ;;  %v2422_v3 = vadd.f32 %v2369_v14, %v2217_v7 }
 0x3ea   :  { %2235 = vst [vmem:[#allocation2 + $0x10] sm:$0xff] %v2231_v11  ;;  %v2232_v13 = vmax.f32 %v2421_v27, 0.0 }
 0x3eb   :  { %2233 = vst [vmem:[#allocation2] sm:$0xff] %v2229_v36  ;;  %v2230_v33 = vmax.f32 %v2422_v3, 0.0 }
 0x3ec   :  { %2236 = vst [vmem:[#allocation2 + $0x18] sm:$0xff] %v2232_v13 }
 0x3ed   :  { %2234 = vst [vmem:[#allocation2 + $0x8] sm:$0xff] %v2230_v33 }
 0x3ee   :  { %2526 = shalt.err (!%p2523_p4)
}
 0x3ef   :  { %s2527_s24 = scalar_lea.hbm %s3276_s7, 512 }
 0x3f0   :  { %p2528_p5 = scmp.ne.s32.totalorder %s3276_s7, %s2527_s24  ;;  %p2531_p6 = scmp.lt.u32.totalorder %s2527_s24, %s3276_s7 }
 0x3f2   :  { %p2533_p7 = pnand %p2531_p6, %p2528_p5 }
 0x3f4   :  { %2536 = shalt.err (!%p2533_p7)
}
 0x3f5   :  { %s2557_s2 = smov 128   ;;  %s2558_s3 = smov 8  }
 0x3f6   :  { %2248 = dma.vmem_to_hbm [thread:$0]  %s2243_s21, 512, %s3276_s7, [#allocation3], %s2557_s2, %s2557_s2, %s2558_s3  }
 0x3f7   :  { %2537 = dma.done.wait [#allocation3], 512  }
 0x3f8   :  { %2538 = vsyncadd [#allocation3], 4294966784 }
 0x3f9   :  { %2252 = vsyncpa [#allocation3], 1 }

</bundles_post_ra>
